<compile_context>
chip_gen: v7x
topology: tpu7x:2x2x1
jax: 0.10.0
libtpu: 0.0.40
codegen_flags: <defaults>
</compile_context>

<pallas_src>
import math

import jax
import jax.numpy as jnp
from jax.experimental import pallas as pl
from jax.experimental.pallas import tpu as pltpu

# --- module-consistent sizes -------------------------------------------------
SEQ_LEN = 8
FEATURE_DIM = 16
EMBED_DIM = 32
N_HEADS = 4
HEAD_DIM = EMBED_DIM // N_HEADS
FF_HIDDEN = 64
LN_EPS = 1e-5

# Packed-parameter slab sizes (rows padded to multiples of 8 sublanes).
WA_ROWS = 120   # 16 (wp) + 32 (wo) + 64 (w2) + 5 bias/LN rows + pad
WB_ROWS = 72    # 32 (wqkv) + 32 (w1, lane-padded) + 2 bias rows + pad

# Demo-sized batching.  In production raise B_TILE so each grid step carries
# >= ~1-2K rows (B_TILE * SEQ_LEN) — VMEM is nowhere near binding at these dims.
BATCH = 16
B_TILE = 8


def _layernorm(x, gamma, beta):
    mean = jnp.mean(x, axis=-1, keepdims=True)
    var = jnp.mean((x - mean) ** 2, axis=-1, keepdims=True)
    return (x - mean) * jax.lax.rsqrt(var + LN_EPS) * gamma + beta


def user_attention_kernel(
    x_ref,     # (B_TILE*S, F)        rows of B_TILE stacked sequences
    wa_ref,    # (WA_ROWS, E)         packed: wp | wo | w2 | bp bo b2 gamma beta
    wb_ref,    # (WB_ROWS, 3E)        packed: wqkv | w1(pad) | bqkv | b1(pad)
    out_ref,   # (B_TILE*S, E)
):
    tr = x_ref.shape[0]               # rows in this tile (static)
    bt = tr // SEQ_LEN                # sequences in this tile (static)

    x = x_ref[...]                    # (TR, F)
    wa = wa_ref[...]                  # (WA_ROWS, E)
    wb = wb_ref[...]                  # (WB_ROWS, 3E)

    # static value slices — unpack the two parameter slabs
    wp = wa[0:16, :]                  # (F, E)   input projection
    wo = wa[16:48, :]                 # (E, E)   attention output projection
    w2 = wa[48:112, :]                # (FF, E)  feed-forward linear2
    bp = wa[112:113, :]
    bo = wa[113:114, :]
    b2 = wa[114:115, :]
    gamma = wa[115:116, :]
    beta = wa[116:117, :]

    wqkv = wb[0:32, :]                # (E, 3E)  fused Q|K|V (scale folded into Q)
    w1 = wb[32:64, :FF_HIDDEN]        # (E, FF)  feed-forward linear1
    bqkv = wb[64:65, :]
    b1 = wb[65:66, :FF_HIDDEN]

    # input projection: (TR, F) @ (F, E)
    h = jnp.dot(x, wp, preferred_element_type=jnp.float32) + bp

    # fused Q/K/V projection: (TR, E) @ (E, 3E).  The 1/sqrt(embed_dim) score
    # scale is already folded into the Q columns / Q bias at param-prep time.
    qkv = jnp.dot(h, wqkv, preferred_element_type=jnp.float32) + bqkv
    qkv3 = qkv.reshape(bt, SEQ_LEN, 3 * EMBED_DIM)       # (BT, S, 3E)

    # Multi-head attention, batched over the BT sequences in this tile.
    # Head concat is fused into the output projection: each head's output is
    # projected with its (D, E) row-slice of W_o and accumulated.
    attn_acc = jnp.zeros((tr, EMBED_DIM), jnp.float32)
    for hh in range(N_HEADS):                            # static unroll (H=4)
        q0 = hh * HEAD_DIM
        k0 = EMBED_DIM + q0
        v0 = 2 * EMBED_DIM + q0
        qh = qkv3[:, :, q0:q0 + HEAD_DIM]                # (BT, S, D)
        kh = qkv3[:, :, k0:k0 + HEAD_DIM]
        vh = qkv3[:, :, v0:v0 + HEAD_DIM]

        s = jnp.einsum("bqd,bkd->bqk", qh, kh,
                       preferred_element_type=jnp.float32)     # (BT, S, S)
        s = s - jnp.max(s, axis=-1, keepdims=True)
        e = jnp.exp(s)
        p = e * pl.reciprocal(jnp.sum(e, axis=-1, keepdims=True), approx=True)
        oh = jnp.einsum("bqk,bkd->bqd", p, vh,
                        preferred_element_type=jnp.float32)    # (BT, S, D)

        attn_acc = attn_acc + jnp.dot(
            oh.reshape(tr, HEAD_DIM),
            wo[hh * HEAD_DIM:(hh + 1) * HEAD_DIM, :],
            preferred_element_type=jnp.float32)
    attn_out = attn_acc + bo

    # residual + layernorm
    r1 = h + attn_out
    ln1 = _layernorm(r1, gamma, beta)

    # position-wise feed-forward
    ff = jnp.maximum(
        jnp.dot(ln1, w1, preferred_element_type=jnp.float32) + b1, 0.0)
    # TODO(synk): nn.Dropout(0.1) has no deterministic Pallas equivalent;
    #             treated as identity (eval-mode semantics).
    ff = jnp.dot(ff, w2, preferred_element_type=jnp.float32) + b2

    # residual + layernorm (same norm weights).  NOTE: out last dim is E=32
    # (<128 lanes) -> partially masked stores; amortized by stacking rows.
    out_ref[...] = _layernorm(ln1 + ff, gamma, beta)


def pack_params(p):
    """Prepare kernel params from torch-like params: fuse QKV, fold the
    1/sqrt(embed_dim) score scale into the Q weight/bias, and pack everything
    into two sublane-aligned slabs (wa: E-wide, wb: 3E-wide)."""
    scale = 1.0 / math.sqrt(EMBED_DIM)
    wqkv = jnp.concatenate([p["wq"] * scale, p["wk"], p["wv"]], axis=1)  # (E, 3E)
    bqkv = jnp.concatenate([p["bq"] * scale, p["bk"], p["bv"]], axis=1)  # (1, 3E)

    wa = jnp.zeros((WA_ROWS, EMBED_DIM), jnp.float32)
    wa = wa.at[0:16, :].set(p["wp"])
    wa = wa.at[16:48, :].set(p["wo"])
    wa = wa.at[48:112, :].set(p["w2"])
    wa = wa.at[112, :].set(p["bp"][0])
    wa = wa.at[113, :].set(p["bo"][0])
    wa = wa.at[114, :].set(p["b2"][0])
    wa = wa.at[115, :].set(p["gamma"][0])
    wa = wa.at[116, :].set(p["beta"][0])

    wb = jnp.zeros((WB_ROWS, 3 * EMBED_DIM), jnp.float32)
    wb = wb.at[0:32, :].set(wqkv)
    wb = wb.at[32:64, :FF_HIDDEN].set(p["w1"])
    wb = wb.at[64, :].set(bqkv[0])
    wb = wb.at[65, :FF_HIDDEN].set(p["b1"][0])

    return {"wa": wa, "wb": wb}


def user_attention_model(x, kp, *, b_tile=B_TILE):
    """x: (BATCH, SEQ_LEN, FEATURE_DIM) of independent sequences."""
    b, s, f = x.shape
    assert s == SEQ_LEN and f == FEATURE_DIM and b % b_tile == 0
    tr = b_tile * SEQ_LEN
    x2 = x.reshape(b * s, f)                       # free (row-major layout)
    grid = (b // b_tile,)

    const = lambda i: (0, 0)                       # params: resident, one DMA
    out = pl.pallas_call(
        user_attention_kernel,
        out_shape=jax.ShapeDtypeStruct((b * s, EMBED_DIM), jnp.float32),
        grid=grid,
        in_specs=[
            pl.BlockSpec((tr, FEATURE_DIM), lambda i: (i, 0)),
            pl.BlockSpec((WA_ROWS, EMBED_DIM), const),
            pl.BlockSpec((WB_ROWS, 3 * EMBED_DIM), const),
        ],
        out_specs=pl.BlockSpec((tr, EMBED_DIM), lambda i: (i, 0)),
        compiler_params=pltpu.CompilerParams(
            dimension_semantics=("parallel",)),    # v7x: shard tiles across TCs
    )(x2, kp["wa"], kp["wb"])
    return out.reshape(b, s, EMBED_DIM)


# --- pure-JAX reference (uses the original, un-fused params) -----------------
def reference_model(x, p):
    h = x @ p["wp"] + p["bp"]
    q = h @ p["wq"] + p["bq"]
    k = h @ p["wk"] + p["bk"]
    v = h @ p["wv"] + p["bv"]
    b, s, _ = x.shape
    qh = q.reshape(b, s, N_HEADS, HEAD_DIM).transpose(0, 2, 1, 3)
    kh = k.reshape(b, s, N_HEADS, HEAD_DIM).transpose(0, 2, 1, 3)
    vh = v.reshape(b, s, N_HEADS, HEAD_DIM).transpose(0, 2, 1, 3)
    scores = jnp.einsum("bhqd,bhkd->bhqk", qh, kh) / math.sqrt(EMBED_DIM)
    attn = jax.nn.softmax(scores, axis=-1)
    ao = jnp.einsum("bhqk,bhkd->bhqd", attn, vh)
    ao = ao.transpose(0, 2, 1, 3).reshape(b, s, EMBED_DIM)
    ao = ao @ p["wo"] + p["bo"]

    def ln(z):
        m = jnp.mean(z, -1, keepdims=True)
        va = jnp.mean((z - m) ** 2, -1, keepdims=True)
        return (z - m) * jax.lax.rsqrt(va + LN_EPS) * p["gamma"] + p["beta"]

    r1 = ln(h + ao)
    ff = jnp.maximum(r1 @ p["w1"] + p["b1"], 0.0) @ p["w2"] + p["b2"]
    return ln(r1 + ff)


def init_params(key):
    ks = jax.random.split(key, 16)

    def w(k, shape, fan_in):
        return (jax.random.uniform(k, shape, jnp.float32, -1.0, 1.0)
                / math.sqrt(fan_in))

    return {
        "wp": w(ks[0], (FEATURE_DIM, EMBED_DIM), FEATURE_DIM),
        "bp": w(ks[1], (1, EMBED_DIM), FEATURE_DIM),
        "wq": w(ks[2], (EMBED_DIM, EMBED_DIM), EMBED_DIM),
        "bq": w(ks[3], (1, EMBED_DIM), EMBED_DIM),
        "wk": w(ks[4], (EMBED_DIM, EMBED_DIM), EMBED_DIM),
        "bk": w(ks[5], (1, EMBED_DIM), EMBED_DIM),
        "wv": w(ks[6], (EMBED_DIM, EMBED_DIM), EMBED_DIM),
        "bv": w(ks[7], (1, EMBED_DIM), EMBED_DIM),
        "wo": w(ks[8], (EMBED_DIM, EMBED_DIM), EMBED_DIM),
        "bo": w(ks[9], (1, EMBED_DIM), EMBED_DIM),
        "w1": w(ks[10], (EMBED_DIM, FF_HIDDEN), EMBED_DIM),
        "b1": w(ks[11], (1, FF_HIDDEN), EMBED_DIM),
        "w2": w(ks[12], (FF_HIDDEN, EMBED_DIM), FF_HIDDEN),
        "b2": w(ks[13], (1, EMBED_DIM), FF_HIDDEN),
        "gamma": jnp.ones((1, EMBED_DIM), jnp.float32),   # nn.LayerNorm defaults
        "beta": jnp.zeros((1, EMBED_DIM), jnp.float32),
    }


if __name__ == "__main__":
    key = jax.random.PRNGKey(0)
    k_x, k_p = jax.random.split(key)
    x = jax.random.normal(k_x, (BATCH, SEQ_LEN, FEATURE_DIM), jnp.float32)
    params = init_params(k_p)
    packed = pack_params(params)

    out = user_attention_model(x, packed)
    out = jax.block_until_ready(out)

    ref = reference_model(x, params)
    assert out.shape == (BATCH, SEQ_LEN, EMBED_DIM)
    max_err = jnp.max(jnp.abs(out - ref))
    # approx reciprocal in the softmax introduces ~1e-4 relative error
    assert jnp.allclose(out, ref, rtol=5e-3, atol=5e-3), (
        f"mismatch: max abs err {max_err}"
    )
    print("KERNEL_OK")
</pallas_src>

<mosaic_0001>
module attributes {stable_mosaic.version = 11 : i64} {
  func.func @user_attention_kernel(%arg0: i32, %arg1: memref<64x16xf32, #tpu.memory_space<vmem>>, %arg2: memref<120x32xf32, #tpu.memory_space<vmem>>, %arg3: memref<72x96xf32, #tpu.memory_space<vmem>>, %arg4: memref<64x32xf32, #tpu.memory_space<vmem>>) attributes {dimension_semantics = [#tpu.dimension_semantics<parallel>], iteration_bounds = array<i64: 2>, scalar_prefetch = 0 : i64, scratch_operands = 0 : i64, tpu.core_type = #tpu.core_type<tc>, window_params = [{transform_indices = @transform_0, window_bounds = array<i64: 64, 16>}, {pipeline_mode = #tpu.pipeline_mode<synchronous>, transform_indices = @transform_1, window_bounds = array<i64: 120, 32>}, {pipeline_mode = #tpu.pipeline_mode<synchronous>, transform_indices = @transform_2, window_bounds = array<i64: 72, 96>}, {transform_indices = @transform_3, window_bounds = array<i64: 64, 32>}]} {
    %c0 = arith.constant 0 : index
    %c0_0 = arith.constant 0 : index
    %0 = vector.load %arg1[%c0, %c0_0] : memref<64x16xf32, #tpu.memory_space<vmem>>, vector<64x16xf32>
    %c0_1 = arith.constant 0 : index
    %c0_2 = arith.constant 0 : index
    %1 = vector.load %arg2[%c0_1, %c0_2] : memref<120x32xf32, #tpu.memory_space<vmem>>, vector<120x32xf32>
    %c0_3 = arith.constant 0 : index
    %c0_4 = arith.constant 0 : index
    %2 = vector.load %arg3[%c0_3, %c0_4] : memref<72x96xf32, #tpu.memory_space<vmem>>, vector<72x96xf32>
    %3 = vector.extract_strided_slice %1 {offsets = [0, 0], sizes = [16, 32], strides = [1, 1]} : vector<120x32xf32> to vector<16x32xf32>
    %4 = vector.extract_strided_slice %1 {offsets = [16, 0], sizes = [32, 32], strides = [1, 1]} : vector<120x32xf32> to vector<32x32xf32>
    %5 = vector.extract_strided_slice %1 {offsets = [48, 0], sizes = [64, 32], strides = [1, 1]} : vector<120x32xf32> to vector<64x32xf32>
    %6 = vector.extract_strided_slice %1 {offsets = [112, 0], sizes = [1, 32], strides = [1, 1]} : vector<120x32xf32> to vector<1x32xf32>
    %7 = vector.extract_strided_slice %1 {offsets = [113, 0], sizes = [1, 32], strides = [1, 1]} : vector<120x32xf32> to vector<1x32xf32>
    %8 = vector.extract_strided_slice %1 {offsets = [114, 0], sizes = [1, 32], strides = [1, 1]} : vector<120x32xf32> to vector<1x32xf32>
    %9 = vector.extract_strided_slice %1 {offsets = [115, 0], sizes = [1, 32], strides = [1, 1]} : vector<120x32xf32> to vector<1x32xf32>
    %10 = vector.extract_strided_slice %1 {offsets = [116, 0], sizes = [1, 32], strides = [1, 1]} : vector<120x32xf32> to vector<1x32xf32>
    %11 = vector.extract_strided_slice %2 {offsets = [0, 0], sizes = [32, 96], strides = [1, 1]} : vector<72x96xf32> to vector<32x96xf32>
    %12 = vector.extract_strided_slice %2 {offsets = [32, 0], sizes = [32, 64], strides = [1, 1]} : vector<72x96xf32> to vector<32x64xf32>
    %13 = vector.extract_strided_slice %2 {offsets = [64, 0], sizes = [1, 96], strides = [1, 1]} : vector<72x96xf32> to vector<1x96xf32>
    %14 = vector.extract_strided_slice %2 {offsets = [65, 0], sizes = [1, 64], strides = [1, 1]} : vector<72x96xf32> to vector<1x64xf32>
    %cst = arith.constant dense<0.000000e+00> : vector<64x32xf32>
    %15 = tpu.matmul %0, %3, %cst {dimension_numbers = #tpu.dot_dimension_numbers<[1], [0], [0], [1], [0, 0, 1, 1], [], []>} : vector<64x16xf32>, vector<16x32xf32>, vector<64x32xf32> -> vector<64x32xf32>
    %16 = vector.broadcast %6 : vector<1x32xf32> to vector<64x32xf32>
    %17 = arith.addf %15, %16 : vector<64x32xf32>
    %cst_5 = arith.constant dense<0.000000e+00> : vector<64x96xf32>
    %18 = tpu.matmul %17, %11, %cst_5 {dimension_numbers = #tpu.dot_dimension_numbers<[1], [0], [0], [1], [0, 0, 1, 1], [], []>} : vector<64x32xf32>, vector<32x96xf32>, vector<64x96xf32> -> vector<64x96xf32>
    %19 = vector.broadcast %13 : vector<1x96xf32> to vector<64x96xf32>
    %20 = arith.addf %18, %19 : vector<64x96xf32>
    %21 = vector.shape_cast %20 : vector<64x96xf32> to vector<8x8x96xf32>
    %cst_6 = arith.constant 0.000000e+00 : f32
    %22 = vector.broadcast %cst_6 : f32 to vector<64x32xf32>
    %23 = vector.extract_strided_slice %21 {offsets = [0, 0, 0], sizes = [8, 8, 8], strides = [1, 1, 1]} : vector<8x8x96xf32> to vector<8x8x8xf32>
    %24 = vector.extract_strided_slice %21 {offsets = [0, 0, 32], sizes = [8, 8, 8], strides = [1, 1, 1]} : vector<8x8x96xf32> to vector<8x8x8xf32>
    %25 = vector.extract_strided_slice %21 {offsets = [0, 0, 64], sizes = [8, 8, 8], strides = [1, 1, 1]} : vector<8x8x96xf32> to vector<8x8x8xf32>
    "tpu.trace_start"() <{level = 10 : i32, message = "bqd,bkd->bqk"}> : () -> ()
    %cst_7 = arith.constant dense<0.000000e+00> : vector<8x8x8xf32>
    %26 = tpu.matmul %23, %24, %cst_7 {dimension_numbers = #tpu.dot_dimension_numbers<[2], [2], [1], [1], [0, 0, 0, 1, 1, 1], [0], [0]>} : vector<8x8x8xf32>, vector<8x8x8xf32>, vector<8x8x8xf32> -> vector<8x8x8xf32>
    "tpu.trace_stop"() : () -> ()
    %cst_8 = arith.constant dense<0xFF800000> : vector<8x8xf32>
    %27 = vector.multi_reduction <maximumf>, %26, %cst_8 [2] : vector<8x8x8xf32> to vector<8x8xf32>
    %28 = vector.shape_cast %27 : vector<8x8xf32> to vector<8x8x1xf32>
    %29 = vector.broadcast %28 : vector<8x8x1xf32> to vector<8x8x8xf32>
    %30 = arith.subf %26, %29 : vector<8x8x8xf32>
    %31 = math.exp %30 : vector<8x8x8xf32>
    %cst_9 = arith.constant dense<0.000000e+00> : vector<8x8xf32>
    %32 = vector.multi_reduction <add>, %31, %cst_9 [2] : vector<8x8x8xf32> to vector<8x8xf32>
    %33 = vector.shape_cast %32 : vector<8x8xf32> to vector<8x8x1xf32>
    %34 = tpu.reciprocal %33 {approx = true} : vector<8x8x1xf32> -> vector<8x8x1xf32>
    %35 = vector.broadcast %34 : vector<8x8x1xf32> to vector<8x8x8xf32>
    %36 = arith.mulf %31, %35 : vector<8x8x8xf32>
    "tpu.trace_start"() <{level = 10 : i32, message = "bqk,bkd->bqd"}> : () -> ()
    %cst_10 = arith.constant dense<0.000000e+00> : vector<8x8x8xf32>
    %37 = tpu.matmul %36, %25, %cst_10 {dimension_numbers = #tpu.dot_dimension_numbers<[2], [1], [1], [2], [0, 0, 0, 1, 1, 2], [0], [0]>} : vector<8x8x8xf32>, vector<8x8x8xf32>, vector<8x8x8xf32> -> vector<8x8x8xf32>
    "tpu.trace_stop"() : () -> ()
    %38 = vector.shape_cast %37 : vector<8x8x8xf32> to vector<64x8xf32>
    %39 = vector.extract_strided_slice %4 {offsets = [0, 0], sizes = [8, 32], strides = [1, 1]} : vector<32x32xf32> to vector<8x32xf32>
    %cst_11 = arith.constant dense<0.000000e+00> : vector<64x32xf32>
    %40 = tpu.matmul %38, %39, %cst_11 {dimension_numbers = #tpu.dot_dimension_numbers<[1], [0], [0], [1], [0, 0, 1, 1], [], []>} : vector<64x8xf32>, vector<8x32xf32>, vector<64x32xf32> -> vector<64x32xf32>
    %41 = arith.addf %22, %40 : vector<64x32xf32>
    %42 = vector.extract_strided_slice %21 {offsets = [0, 0, 8], sizes = [8, 8, 8], strides = [1, 1, 1]} : vector<8x8x96xf32> to vector<8x8x8xf32>
    %43 = vector.extract_strided_slice %21 {offsets = [0, 0, 40], sizes = [8, 8, 8], strides = [1, 1, 1]} : vector<8x8x96xf32> to vector<8x8x8xf32>
    %44 = vector.extract_strided_slice %21 {offsets = [0, 0, 72], sizes = [8, 8, 8], strides = [1, 1, 1]} : vector<8x8x96xf32> to vector<8x8x8xf32>
    "tpu.trace_start"() <{level = 10 : i32, message = "bqd,bkd->bqk"}> : () -> ()
    %cst_12 = arith.constant dense<0.000000e+00> : vector<8x8x8xf32>
    %45 = tpu.matmul %42, %43, %cst_12 {dimension_numbers = #tpu.dot_dimension_numbers<[2], [2], [1], [1], [0, 0, 0, 1, 1, 1], [0], [0]>} : vector<8x8x8xf32>, vector<8x8x8xf32>, vector<8x8x8xf32> -> vector<8x8x8xf32>
    "tpu.trace_stop"() : () -> ()
    %cst_13 = arith.constant dense<0xFF800000> : vector<8x8xf32>
    %46 = vector.multi_reduction <maximumf>, %45, %cst_13 [2] : vector<8x8x8xf32> to vector<8x8xf32>
    %47 = vector.shape_cast %46 : vector<8x8xf32> to vector<8x8x1xf32>
    %48 = vector.broadcast %47 : vector<8x8x1xf32> to vector<8x8x8xf32>
    %49 = arith.subf %45, %48 : vector<8x8x8xf32>
    %50 = math.exp %49 : vector<8x8x8xf32>
    %cst_14 = arith.constant dense<0.000000e+00> : vector<8x8xf32>
    %51 = vector.multi_reduction <add>, %50, %cst_14 [2] : vector<8x8x8xf32> to vector<8x8xf32>
    %52 = vector.shape_cast %51 : vector<8x8xf32> to vector<8x8x1xf32>
    %53 = tpu.reciprocal %52 {approx = true} : vector<8x8x1xf32> -> vector<8x8x1xf32>
    %54 = vector.broadcast %53 : vector<8x8x1xf32> to vector<8x8x8xf32>
    %55 = arith.mulf %50, %54 : vector<8x8x8xf32>
    "tpu.trace_start"() <{level = 10 : i32, message = "bqk,bkd->bqd"}> : () -> ()
    %cst_15 = arith.constant dense<0.000000e+00> : vector<8x8x8xf32>
    %56 = tpu.matmul %55, %44, %cst_15 {dimension_numbers = #tpu.dot_dimension_numbers<[2], [1], [1], [2], [0, 0, 0, 1, 1, 2], [0], [0]>} : vector<8x8x8xf32>, vector<8x8x8xf32>, vector<8x8x8xf32> -> vector<8x8x8xf32>
    "tpu.trace_stop"() : () -> ()
    %57 = vector.shape_cast %56 : vector<8x8x8xf32> to vector<64x8xf32>
    %58 = vector.extract_strided_slice %4 {offsets = [8, 0], sizes = [8, 32], strides = [1, 1]} : vector<32x32xf32> to vector<8x32xf32>
    %cst_16 = arith.constant dense<0.000000e+00> : vector<64x32xf32>
    %59 = tpu.matmul %57, %58, %cst_16 {dimension_numbers = #tpu.dot_dimension_numbers<[1], [0], [0], [1], [0, 0, 1, 1], [], []>} : vector<64x8xf32>, vector<8x32xf32>, vector<64x32xf32> -> vector<64x32xf32>
    %60 = arith.addf %41, %59 : vector<64x32xf32>
    %61 = vector.extract_strided_slice %21 {offsets = [0, 0, 16], sizes = [8, 8, 8], strides = [1, 1, 1]} : vector<8x8x96xf32> to vector<8x8x8xf32>
    %62 = vector.extract_strided_slice %21 {offsets = [0, 0, 48], sizes = [8, 8, 8], strides = [1, 1, 1]} : vector<8x8x96xf32> to vector<8x8x8xf32>
    %63 = vector.extract_strided_slice %21 {offsets = [0, 0, 80], sizes = [8, 8, 8], strides = [1, 1, 1]} : vector<8x8x96xf32> to vector<8x8x8xf32>
    "tpu.trace_start"() <{level = 10 : i32, message = "bqd,bkd->bqk"}> : () -> ()
    %cst_17 = arith.constant dense<0.000000e+00> : vector<8x8x8xf32>
    %64 = tpu.matmul %61, %62, %cst_17 {dimension_numbers = #tpu.dot_dimension_numbers<[2], [2], [1], [1], [0, 0, 0, 1, 1, 1], [0], [0]>} : vector<8x8x8xf32>, vector<8x8x8xf32>, vector<8x8x8xf32> -> vector<8x8x8xf32>
    "tpu.trace_stop"() : () -> ()
    %cst_18 = arith.constant dense<0xFF800000> : vector<8x8xf32>
    %65 = vector.multi_reduction <maximumf>, %64, %cst_18 [2] : vector<8x8x8xf32> to vector<8x8xf32>
    %66 = vector.shape_cast %65 : vector<8x8xf32> to vector<8x8x1xf32>
    %67 = vector.broadcast %66 : vector<8x8x1xf32> to vector<8x8x8xf32>
    %68 = arith.subf %64, %67 : vector<8x8x8xf32>
    %69 = math.exp %68 : vector<8x8x8xf32>
    %cst_19 = arith.constant dense<0.000000e+00> : vector<8x8xf32>
    %70 = vector.multi_reduction <add>, %69, %cst_19 [2] : vector<8x8x8xf32> to vector<8x8xf32>
    %71 = vector.shape_cast %70 : vector<8x8xf32> to vector<8x8x1xf32>
    %72 = tpu.reciprocal %71 {approx = true} : vector<8x8x1xf32> -> vector<8x8x1xf32>
    %73 = vector.broadcast %72 : vector<8x8x1xf32> to vector<8x8x8xf32>
    %74 = arith.mulf %69, %73 : vector<8x8x8xf32>
    "tpu.trace_start"() <{level = 10 : i32, message = "bqk,bkd->bqd"}> : () -> ()
    %cst_20 = arith.constant dense<0.000000e+00> : vector<8x8x8xf32>
    %75 = tpu.matmul %74, %63, %cst_20 {dimension_numbers = #tpu.dot_dimension_numbers<[2], [1], [1], [2], [0, 0, 0, 1, 1, 2], [0], [0]>} : vector<8x8x8xf32>, vector<8x8x8xf32>, vector<8x8x8xf32> -> vector<8x8x8xf32>
    "tpu.trace_stop"() : () -> ()
    %76 = vector.shape_cast %75 : vector<8x8x8xf32> to vector<64x8xf32>
    %77 = vector.extract_strided_slice %4 {offsets = [16, 0], sizes = [8, 32], strides = [1, 1]} : vector<32x32xf32> to vector<8x32xf32>
    %cst_21 = arith.constant dense<0.000000e+00> : vector<64x32xf32>
    %78 = tpu.matmul %76, %77, %cst_21 {dimension_numbers = #tpu.dot_dimension_numbers<[1], [0], [0], [1], [0, 0, 1, 1], [], []>} : vector<64x8xf32>, vector<8x32xf32>, vector<64x32xf32> -> vector<64x32xf32>
    %79 = arith.addf %60, %78 : vector<64x32xf32>
    %80 = vector.extract_strided_slice %21 {offsets = [0, 0, 24], sizes = [8, 8, 8], strides = [1, 1, 1]} : vector<8x8x96xf32> to vector<8x8x8xf32>
    %81 = vector.extract_strided_slice %21 {offsets = [0, 0, 56], sizes = [8, 8, 8], strides = [1, 1, 1]} : vector<8x8x96xf32> to vector<8x8x8xf32>
    %82 = vector.extract_strided_slice %21 {offsets = [0, 0, 88], sizes = [8, 8, 8], strides = [1, 1, 1]} : vector<8x8x96xf32> to vector<8x8x8xf32>
    "tpu.trace_start"() <{level = 10 : i32, message = "bqd,bkd->bqk"}> : () -> ()
    %cst_22 = arith.constant dense<0.000000e+00> : vector<8x8x8xf32>
    %83 = tpu.matmul %80, %81, %cst_22 {dimension_numbers = #tpu.dot_dimension_numbers<[2], [2], [1], [1], [0, 0, 0, 1, 1, 1], [0], [0]>} : vector<8x8x8xf32>, vector<8x8x8xf32>, vector<8x8x8xf32> -> vector<8x8x8xf32>
    "tpu.trace_stop"() : () -> ()
    %cst_23 = arith.constant dense<0xFF800000> : vector<8x8xf32>
    %84 = vector.multi_reduction <maximumf>, %83, %cst_23 [2] : vector<8x8x8xf32> to vector<8x8xf32>
    %85 = vector.shape_cast %84 : vector<8x8xf32> to vector<8x8x1xf32>
    %86 = vector.broadcast %85 : vector<8x8x1xf32> to vector<8x8x8xf32>
    %87 = arith.subf %83, %86 : vector<8x8x8xf32>
    %88 = math.exp %87 : vector<8x8x8xf32>
    %cst_24 = arith.constant dense<0.000000e+00> : vector<8x8xf32>
    %89 = vector.multi_reduction <add>, %88, %cst_24 [2] : vector<8x8x8xf32> to vector<8x8xf32>
    %90 = vector.shape_cast %89 : vector<8x8xf32> to vector<8x8x1xf32>
    %91 = tpu.reciprocal %90 {approx = true} : vector<8x8x1xf32> -> vector<8x8x1xf32>
    %92 = vector.broadcast %91 : vector<8x8x1xf32> to vector<8x8x8xf32>
    %93 = arith.mulf %88, %92 : vector<8x8x8xf32>
    "tpu.trace_start"() <{level = 10 : i32, message = "bqk,bkd->bqd"}> : () -> ()
    %cst_25 = arith.constant dense<0.000000e+00> : vector<8x8x8xf32>
    %94 = tpu.matmul %93, %82, %cst_25 {dimension_numbers = #tpu.dot_dimension_numbers<[2], [1], [1], [2], [0, 0, 0, 1, 1, 2], [0], [0]>} : vector<8x8x8xf32>, vector<8x8x8xf32>, vector<8x8x8xf32> -> vector<8x8x8xf32>
    "tpu.trace_stop"() : () -> ()
    %95 = vector.shape_cast %94 : vector<8x8x8xf32> to vector<64x8xf32>
    %96 = vector.extract_strided_slice %4 {offsets = [24, 0], sizes = [8, 32], strides = [1, 1]} : vector<32x32xf32> to vector<8x32xf32>
    %cst_26 = arith.constant dense<0.000000e+00> : vector<64x32xf32>
    %97 = tpu.matmul %95, %96, %cst_26 {dimension_numbers = #tpu.dot_dimension_numbers<[1], [0], [0], [1], [0, 0, 1, 1], [], []>} : vector<64x8xf32>, vector<8x32xf32>, vector<64x32xf32> -> vector<64x32xf32>
    %98 = arith.addf %79, %97 : vector<64x32xf32>
    %99 = vector.broadcast %7 : vector<1x32xf32> to vector<64x32xf32>
    %100 = arith.addf %98, %99 : vector<64x32xf32>
    %101 = arith.addf %17, %100 : vector<64x32xf32>
    %cst_27 = arith.constant dense<0.000000e+00> : vector<64xf32>
    %102 = vector.multi_reduction <add>, %101, %cst_27 [1] : vector<64x32xf32> to vector<64xf32>
    %103 = vector.shape_cast %102 : vector<64xf32> to vector<64x1xf32>
    %cst_28 = arith.constant 3.200000e+01 : f32
    %104 = vector.broadcast %cst_28 : f32 to vector<64x1xf32>
    %105 = arith.divf %103, %104 : vector<64x1xf32>
    %106 = vector.broadcast %105 : vector<64x1xf32> to vector<64x32xf32>
    %107 = arith.subf %101, %106 : vector<64x32xf32>
    %108 = arith.mulf %107, %107 : vector<64x32xf32>
    %cst_29 = arith.constant dense<0.000000e+00> : vector<64xf32>
    %109 = vector.multi_reduction <add>, %108, %cst_29 [1] : vector<64x32xf32> to vector<64xf32>
    %110 = vector.shape_cast %109 : vector<64xf32> to vector<64x1xf32>
    %cst_30 = arith.constant 3.200000e+01 : f32
    %111 = vector.broadcast %cst_30 : f32 to vector<64x1xf32>
    %112 = arith.divf %110, %111 : vector<64x1xf32>
    %113 = vector.broadcast %105 : vector<64x1xf32> to vector<64x32xf32>
    %114 = arith.subf %101, %113 : vector<64x32xf32>
    %cst_31 = arith.constant 9.99999974E-6 : f32
    %115 = vector.broadcast %cst_31 : f32 to vector<64x1xf32>
    %116 = arith.addf %112, %115 : vector<64x1xf32>
    %117 = math.rsqrt %116 : vector<64x1xf32>
    %118 = vector.broadcast %117 : vector<64x1xf32> to vector<64x32xf32>
    %119 = arith.mulf %114, %118 : vector<64x32xf32>
    %120 = vector.broadcast %9 : vector<1x32xf32> to vector<64x32xf32>
    %121 = arith.mulf %119, %120 : vector<64x32xf32>
    %122 = vector.broadcast %10 : vector<1x32xf32> to vector<64x32xf32>
    %123 = arith.addf %121, %122 : vector<64x32xf32>
    %cst_32 = arith.constant dense<0.000000e+00> : vector<64x64xf32>
    %124 = tpu.matmul %123, %12, %cst_32 {dimension_numbers = #tpu.dot_dimension_numbers<[1], [0], [0], [1], [0, 0, 1, 1], [], []>} : vector<64x32xf32>, vector<32x64xf32>, vector<64x64xf32> -> vector<64x64xf32>
    %125 = vector.broadcast %14 : vector<1x64xf32> to vector<64x64xf32>
    %126 = arith.addf %124, %125 : vector<64x64xf32>
    %cst_33 = arith.constant 0.000000e+00 : f32
    %127 = vector.broadcast %cst_33 : f32 to vector<64x64xf32>
    %128 = arith.maximumf %126, %127 : vector<64x64xf32>
    %cst_34 = arith.constant dense<0.000000e+00> : vector<64x32xf32>
    %129 = tpu.matmul %128, %5, %cst_34 {dimension_numbers = #tpu.dot_dimension_numbers<[1], [0], [0], [1], [0, 0, 1, 1], [], []>} : vector<64x64xf32>, vector<64x32xf32>, vector<64x32xf32> -> vector<64x32xf32>
    %130 = vector.broadcast %8 : vector<1x32xf32> to vector<64x32xf32>
    %131 = arith.addf %129, %130 : vector<64x32xf32>
    %132 = arith.addf %123, %131 : vector<64x32xf32>
    %cst_35 = arith.constant dense<0.000000e+00> : vector<64xf32>
    %133 = vector.multi_reduction <add>, %132, %cst_35 [1] : vector<64x32xf32> to vector<64xf32>
    %134 = vector.shape_cast %133 : vector<64xf32> to vector<64x1xf32>
    %cst_36 = arith.constant 3.200000e+01 : f32
    %135 = vector.broadcast %cst_36 : f32 to vector<64x1xf32>
    %136 = arith.divf %134, %135 : vector<64x1xf32>
    %137 = vector.broadcast %136 : vector<64x1xf32> to vector<64x32xf32>
    %138 = arith.subf %132, %137 : vector<64x32xf32>
    %139 = arith.mulf %138, %138 : vector<64x32xf32>
    %cst_37 = arith.constant dense<0.000000e+00> : vector<64xf32>
    %140 = vector.multi_reduction <add>, %139, %cst_37 [1] : vector<64x32xf32> to vector<64xf32>
    %141 = vector.shape_cast %140 : vector<64xf32> to vector<64x1xf32>
    %cst_38 = arith.constant 3.200000e+01 : f32
    %142 = vector.broadcast %cst_38 : f32 to vector<64x1xf32>
    %143 = arith.divf %141, %142 : vector<64x1xf32>
    %144 = vector.broadcast %136 : vector<64x1xf32> to vector<64x32xf32>
    %145 = arith.subf %132, %144 : vector<64x32xf32>
    %cst_39 = arith.constant 9.99999974E-6 : f32
    %146 = vector.broadcast %cst_39 : f32 to vector<64x1xf32>
    %147 = arith.addf %143, %146 : vector<64x1xf32>
    %148 = math.rsqrt %147 : vector<64x1xf32>
    %149 = vector.broadcast %148 : vector<64x1xf32> to vector<64x32xf32>
    %150 = arith.mulf %145, %149 : vector<64x32xf32>
    %151 = vector.broadcast %9 : vector<1x32xf32> to vector<64x32xf32>
    %152 = arith.mulf %150, %151 : vector<64x32xf32>
    %153 = vector.broadcast %10 : vector<1x32xf32> to vector<64x32xf32>
    %154 = arith.addf %152, %153 : vector<64x32xf32>
    %c0_40 = arith.constant 0 : index
    %c0_41 = arith.constant 0 : index
    %155 = vector.load %arg4[%c0_40, %c0_41] : memref<64x32xf32, #tpu.memory_space<vmem>>, vector<64x32xf32>
    tpu.vector_store %arg4[%c0_40, %c0_41], %154 {strides = array<i32>} : memref<64x32xf32, #tpu.memory_space<vmem>>, vector<64x32xf32>,
    return
  }
  func.func @transform_0(%arg0: i32) -> (i32, i32) {
    %c0_i32 = arith.constant 0 : i32
    %c0_i32_0 = arith.constant 0 : i32
    return %arg0, %c0_i32 : i32, i32
  }
  func.func @transform_1(%arg0: i32) -> (i32, i32) {
    %c0_i32 = arith.constant 0 : i32
    %c0_i32_0 = arith.constant 0 : i32
    %c0_i32_1 = arith.constant 0 : i32
    return %c0_i32, %c0_i32_0 : i32, i32
  }
  func.func @transform_2(%arg0: i32) -> (i32, i32) {
    %c0_i32 = arith.constant 0 : i32
    %c0_i32_0 = arith.constant 0 : i32
    %c0_i32_1 = arith.constant 0 : i32
    return %c0_i32, %c0_i32_0 : i32, i32
  }
  func.func @transform_3(%arg0: i32) -> (i32, i32) {
    %c0_i32 = arith.constant 0 : i32
    %c0_i32_0 = arith.constant 0 : i32
    return %arg0, %c0_i32 : i32, i32
  }
}

</mosaic_0001>

<bundles_post_ra>
// kernel: tpu_custom_call.1
= control target key start
LH: loop header
LB: loop body
LE: loop exit
PB: predicated region body
PF: predicated region fallthrough
CT: control target
= control target key end

     0   :  { %s8028_s12 = smov 0   ;;  %s9155_s0 = inlined_call_operand.vmem [shape: f32[128,16], index: 0, kind: input, shape index: {}]   ;;  %s9156_s1 = inlined_call_operand.vmem [shape: f32[120,32], index: 1, kind: input, shape index: {}]   ;;  %s9157_s2 = inlined_call_operand.vmem [shape: f32[72,96], index: 2, kind: input, shape index: {}]   ;;  %s9158_s3 = inlined_call_operand.vmem [shape: f32[128,32], index: 3, kind: output, shape index: {}]  }
   0x1 LB: > { %s6895_s13 = sadd.s32 4294967295, %s7993_s12   ;;  %p6899_p0 = scmp.ge.s32.totalorder %s7993_s12, 1  ;;  %s7993_s12 = sphi %s8028_s12, %s13_s12  }
   0x2   : > { %p138_p1 = scmp.lt.s32.totalorder %s7993_s12, 3 }
   0x4   : > { %p139_p2 = pnand %p6899_p0, %p138_p1 }
   0x5   : > { %v182_v0 = vld [vmem:[%s9156_s1] sm:$0xff] (!%p139_p2)  ;;  %v183_v1 = vld [vmem:[%s9156_s1 + $0x8] sm:$0xff] (!%p139_p2)  ;;  %s6900_s18 = sshll.u32 (!%p139_p2), %s6895_s13, 3  ;;  %v199_v5 = vld [vmem:[%s9157_s2 + $0x10] sm:$0xff] (!%p139_p2)  ;;  %vm210_vm0 = vcmask (!%p139_p2), 130048   ;;  %v206_v17 = vlaneseq (!%p139_p2)  ;;  %vm344_vm1 = vcmask (!%p139_p2), 261120  }
   0x6   : > { %142 = sbr.rel (%p139_p2) target bundleno = 4545 (0x11c1), region = 32  ;;  %v197_v2 = vld [vmem:[%s9157_s2] sm:$0xff] (!%p139_p2)  ;;  %v7740_v3 = vpack.c.bf16 (!%p139_p2), %v183_v1, %v182_v0  ;;  %p163_p3 = scmp.lt.s32.totalorder (!%p139_p2), %s6900_s18, 15  ;;  %v198_v4 = vld [vmem:[%s9157_s2 + $0x8] sm:$0xff] (!%p139_p2)  ;;  %v200_v6 = vld [vmem:[%s9157_s2 + $0x18] sm:$0xff] (!%p139_p2)  ;;  %v7995_v38 = vmov (!%p139_p2), 0.0  }
   0x7   : > { %v7744_v7 = vpack.c.bf16 (!%p139_p2), %v198_v4, %v197_v2  ;;  %v7748_v8 = vpack.c.bf16 (!%p139_p2), %v200_v6, %v199_v5  ;;  %v8070_v18 = vshrl.u32 (!%p139_p2), %v206_v17, 7  ;;  %v196_v20 = vld [vmem:[%s9156_s1 + $0x70] sm:$0xff] (!%p139_p2)  ;;  %vm7996_vm2 = vmmov (!%p139_p2), 0   ;;  %v205_v39 = vld [vmem:[%s9157_s2 + $0x40] sm:$0xff] (!%p139_p2)  ;;  %s7997_s8 = smov (!%p139_p2), 96   ;;  %s7998_s9 = smov (!%p139_p2), 64  }
   0x8   : > { %7741 = vmatprep.subr.bf16.mxu0 (!%p139_p2), %v7740_v3  ;;  %vm477_vm3 = vcmask (!%p139_p2), 64512   ;;  %s7999_s10 = smov (!%p139_p2), 120   ;;  %s8000_s11 = smov (!%p139_p2), 88   ;;  %vm6573_vm4 = vcmask (!%p139_p2), 523264  }
   0x9   : > { %7743 = vmatpush3.bf16.msra.mxu0 (!%p139_p2), %v7740_v3  ;;  %7776 = vmatprep.subr.bf16.mxu1 (!%p139_p2), %v7744_v7  ;;  %v208_v19 = vsub.s32 (!%p139_p2), 0, %v8070_v18  ;;  %s8001_s13 = smov (!%p139_p2), 56   ;;  %s8002_s14 = smov (!%p139_p2), 80  }
   0xa   : > { %7745 = vmatprep.subr.bf16.mxu0 (!%p139_p2), %v7744_v7  ;;  %7778 = vmatpush3.bf16.msra.mxu1 (!%p139_p2), %v7744_v7  ;;  %s8003_s15 = smov (!%p139_p2), 112   ;;  %s8004_s16 = smov (!%p139_p2), 48  }
   0xb   : > { %7777 = vmatprep.subr.bf16.mxu1 (!%p139_p2), %v7748_v8  ;;  %v209_v21 = vrot.slane (!%p139_p2), %v196_v20, %v208_v19  ;;  %v343_v40 = vrot.slane (!%p139_p2), %v205_v39, %v208_v19  ;;  %s8005_s22 = smov (!%p139_p2), 104   ;;  %s8006_s23 = smov (!%p139_p2), 72  }
   0xc   : > { %s8007_s26 = smov (!%p139_p2), 40  }
   0xd   : > { %s9160_s18 = smov (!%p163_p3, %s6900_s18), 15 }
   0xe   : > { %s6901_s27 = sshll.u32 %s9160_s18, 3  ;;  %7779 = vmatpush3.bf16.msra.mxu1 %v7748_v8 }
   0xf   : > { %s166_s30 = scalar_lea.vmem %s9155_s0, %s6901_s27  ;;  %7326 = vmatprep.subr.mxu1 %v7995_v38 }
  0x10   : > { %v174_v9 = vld [vmem:[%s166_s30] sm:$0xff]  ;;  %v175_v10 = vld [vmem:[%s166_s30 + $0x8] sm:$0xff]  ;;  %v176_v11 = vld [vmem:[%s166_s30 + $0x10] sm:$0xff] }
  0x11   : > { %7284 = vmatprep.mubr.msk.f32.mxu0 %vm210_vm0, %v174_v9  ;;  %v177_v12 = vld [vmem:[%s166_s30 + $0x18] sm:$0xff]  ;;  %v178_v13 = vld [vmem:[%s166_s30 + $0x20] sm:$0xff]  ;;  %v179_v14 = vld [vmem:[%s166_s30 + $0x28] sm:$0xff] }
  0x12   : > { %7285 = vmatmul.mubr.msk.f32.vlgmr.msra.gmra.mrb[0].mxu0 %vm210_vm0, %v175_v10  ;;  %v180_v15 = vld [vmem:[%s166_s30 + $0x30] sm:$0xff]  ;;  %v181_v16 = vld [vmem:[%s166_s30 + $0x38] sm:$0xff] }
  0x13   : > { %7287 = vmatprep.mubr.msk.f32.mxu0 %vm210_vm0, %v176_v11  ;;  %7747 = vmatpush3.bf16.msra.mxu0 %v7744_v7 }
  0x14   : > { %7749 = vmatprep.subr.bf16.mxu0 %v7748_v8 }
  0x16   : > { %7288 = vmatmul.mubr.msk.f32.gmra.mrb[2].mxu0 %vm210_vm0, %v177_v12 }
  0x17   : > { %7290 = vmatprep.mubr.msk.f32.mxu0 %vm210_vm0, %v178_v13  ;;  %7751 = vmatpush3.bf16.msra.mxu0 %v7748_v8 }
  0x18   : > { %7316 = vmatprep.subr.mxu0 %v7995_v38 }
  0x1a   : > { %7291 = vmatmul.mubr.msk.f32.gmra.mrb[4].mxu0 %vm210_vm0, %v179_v14 }
  0x1b   : > { %7293 = vmatprep.mubr.msk.f32.mxu0 %vm210_vm0, %v180_v15 }
  0x1e   : > { %7294 = vmatmul.mubr.msk.f32.gmra.mrb[6].mxu0 %vm210_vm0, %v181_v16 }
  0xe5   : > { %v7286_v22 = vpop.f32.mrb[0].mxu0 }
  0xe6   : > { %v301_v23 = vpop.f32.mrb[1].mxu0  ;;  %v8078_v25 = vadd.f32 %v7286_v22, %v209_v21 }
  0xe7   : > { %v8076_v24 = vadd.f32 %v301_v23, %v209_v21 }
  0xe9   : > { %v7289_v26 = vpop.f32.mrb[2].mxu0  ;;  %7304 = vmatprep.mubr.msk.f32.mxu0 %vm344_vm1, %v8076_v24 }
  0xea   : > { %v8082_v27 = vadd.f32 %v7289_v26, %v209_v21  ;;  %v311_v28 = vpop.f32.mrb[3].mxu0  ;;  %7305 = vmatmul.mubr.msk.f32.vlgmr.msra.gmra.mrb[8].mxu0 %vm344_vm1, %v8078_v25 }
  0xeb   : > { %v8086_v29 = vadd.f32 %v311_v28, %v209_v21  ;;  %7318 = vmatprep.mubr.msk.f32.mxu0 %vm7996_vm2, %v7995_v38 }
  0xed   : > { %v7292_v30 = vpop.f32.mrb[4].mxu0  ;;  %7307 = vmatprep.mubr.msk.f32.mxu1 %vm344_vm1, %v8086_v29 }
  0xee   : > { %v8090_v31 = vadd.f32 %v7292_v30, %v209_v21  ;;  %v321_v32 = vpop.f32.mrb[5].mxu0  ;;  %7308 = vmatmul.mubr.msk.f32.vlgmr.msra.gmra.mrb[0].mxu1 %vm344_vm1, %v8082_v27 }
  0xef   : > { %v8094_v33 = vadd.f32 %v321_v32, %v209_v21 }
  0xf1   : > { %v7295_v34 = vpop.f32.mrb[6].mxu0  ;;  %7310 = vmatprep.mubr.msk.f32.mxu1 %vm344_vm1, %v8094_v33 }
  0xf2   : > { %v8098_v35 = vadd.f32 %v7295_v34, %v209_v21  ;;  %v331_v36 = vpop.f32.mrb[7].mxu0  ;;  %7311 = vmatmul.mubr.msk.f32.gmra.mrb[2].mxu1 %vm344_vm1, %v8090_v31 }
  0xf3   : > { %v8102_v37 = vadd.f32 %v331_v36, %v209_v21 }
  0xf5   : > { %7313 = vmatprep.mubr.msk.f32.mxu1 %vm344_vm1, %v8102_v37 }
  0xf6   : > { %7314 = vmatmul.mubr.msk.f32.gmra.mrb[4].mxu1 %vm344_vm1, %v8098_v35 }
  0xf7   : > { %7328 = vmatprep.mubr.msk.f32.mxu1 %vm7996_vm2, %v7995_v38 }
 0x1bd   : > { %v7306_v41 = vpop.f32.mrb[8].mxu0 }
 0x1be   : > { %v435_v42 = vpop.f32.mrb[9].mxu0  ;;  %v8122_v47 = vadd.f32 %v7306_v41, %v343_v40 }
 0x1bf   : > { %v8117_v43 = vadd.f32 %v435_v42, %v343_v40 }
 0x1c1   : > { %v7309_v44 = vpop.f32.mrb[0].mxu1  ;;  %475 = vrot.lane.b32.xlu0 %v8117_v43, %s7997_s8 }
 0x1c2   : > { %v8120_v45 = vadd.f32 %v7309_v44, %v343_v40  ;;  %v445_v46 = vpop.f32.mrb[1].mxu1 }
 0x1c3   : > { %v8129_v52 = vadd.f32 %v445_v46, %v343_v40 }
 0x1c4   : > { %707 = vrot.lane.b32.xlu1 %v8120_v45, %s7997_s8 }
 0x1c5   : > { %v7312_v48 = vpop.f32.mrb[2].mxu1  ;;  %553 = vrot.lane.b32.xlu0 %v8122_v47, %s7997_s8 }
 0x1c6   : > { %v8126_v49 = vadd.f32 %v7312_v48, %v343_v40  ;;  %v455_v50 = vpop.f32.mrb[3].mxu1 }
 0x1c7   : > { %v8133_v55 = vadd.f32 %v455_v50, %v343_v40 }
 0x1c8   : > { %861 = vrot.lane.b32.xlu1 %v8126_v49, %s7997_s8 }
 0x1c9   : > { %v7315_v51 = vpop.f32.mrb[4].mxu1 }
 0x1ca   : > { %v8131_v53 = vadd.f32 %v7315_v51, %v343_v40  ;;  %v465_v54 = vpop.f32.mrb[5].mxu1 }
 0x1cb   : > { %v8137_v56 = vadd.f32 %v465_v54, %v343_v40 }
 0x1cc   : > { %630 = vrot.lane.b32.xlu1 %v8129_v52, %s7997_s8  ;;  %1015 = vrot.lane.b32.xlu0 %v8131_v53, %s7997_s8 }
 0x1d0   : > { %784 = vrot.lane.b32.xlu0 %v8133_v55, %s7997_s8  ;;  %938 = vrot.lane.b32.xlu1 %v8137_v56, %s7997_s8 }
 0x233   : > { %v476_v57 = vpop.permute.xlu0 %475 }
 0x234   : > { %7317 = vmatpush3.xpose.msk.msra.mxu0 %vm477_vm3, %v476_v57 }
 0x235   : > { %7321 = vmatprep.subr.mxu0 %v7995_v38 }
 0x236   : > { %v708_v58 = vpop.permute.xlu1 %707 }
 0x237   : > { %7319 = vmatmul.mubr.msk.f32.vlgmr.msra.gmra.mrb[10].mxu0 %vm477_vm3, %v8117_v43  ;;  %v554_v59 = vpop.permute.xlu0 %553 }
 0x238   : > { %7322 = vmatpush3.xpose.msk.msra.mxu0 %vm477_vm3, %v554_v59  ;;  %7323 = vmatprep.mubr.msk.f32.mxu0 %vm7996_vm2, %v7995_v38 }
 0x239   : > { %7331 = vmatprep.subr.mxu0 %v7995_v38 }
 0x23a   : > { %v862_v60 = vpop.permute.xlu1 %861 }
 0x23b   : > { %7324 = vmatmul.mubr.msk.f32.vlgmr.msra.gmra.mrb[12].mxu0 %vm477_vm3, %v8122_v47 }
 0x23c   : > { %7332 = vmatpush3.xpose.msk.msra.mxu0 %vm477_vm3, %v708_v58  ;;  %7333 = vmatprep.mubr.msk.f32.mxu0 %vm7996_vm2, %v7995_v38 }
 0x23d   : > { %7341 = vmatprep.subr.mxu0 %v7995_v38 }
 0x23e   : > { %v631_v61 = vpop.permute.xlu1 %630  ;;  %v1016_v62 = vpop.permute.xlu0 %1015 }
 0x23f   : > { %7327 = vmatpush3.xpose.msk.msra.mxu1 %vm477_vm3, %v631_v61  ;;  %7334 = vmatmul.mubr.msk.f32.vlgmr.msra.gmra.mrb[14].mxu0 %vm477_vm3, %v8120_v45 }
 0x240   : > { %7342 = vmatpush3.xpose.msk.msra.mxu0 %vm477_vm3, %v862_v60  ;;  %7336 = vmatprep.subr.mxu1 %v7995_v38 }
 0x241   : > { %7343 = vmatprep.mubr.msk.f32.mxu0 %vm7996_vm2, %v7995_v38  ;;  %7351 = vmatprep.subr.mxu0 %v7995_v38 }
 0x242   : > { %7329 = vmatmul.mubr.msk.f32.vlgmr.msra.gmra.mrb[6].mxu1 %vm477_vm3, %v8129_v52  ;;  %v785_v63 = vpop.permute.xlu0 %784  ;;  %v939_v0 = vpop.permute.xlu1 %938 }
 0x243   : > { %7337 = vmatpush3.xpose.msk.msra.mxu1 %vm477_vm3, %v785_v63  ;;  %7344 = vmatmul.mubr.msk.f32.vlgmr.msra.gmra.mrb[16].mxu0 %vm477_vm3, %v8126_v49 }
 0x244   : > { %7352 = vmatpush3.xpose.msk.msra.mxu0 %vm477_vm3, %v1016_v62  ;;  %7338 = vmatprep.mubr.msk.f32.mxu1 %vm7996_vm2, %v7995_v38 }
 0x245   : > { %7346 = vmatprep.subr.mxu1 %v7995_v38  ;;  %7353 = vmatprep.mubr.msk.f32.mxu0 %vm7996_vm2, %v7995_v38 }
 0x246   : > { %7339 = vmatmul.mubr.msk.f32.vlgmr.msra.gmra.mrb[8].mxu1 %vm477_vm3, %v8133_v55  ;;  %7361 = vmatprep.subr.mxu0 %v7995_v38 }
 0x247   : > { %7347 = vmatpush3.xpose.msk.msra.mxu1 %vm477_vm3, %v939_v0  ;;  %7354 = vmatmul.mubr.msk.f32.vlgmr.msra.gmra.mrb[18].mxu0 %vm477_vm3, %v8131_v53 }
 0x248   : > { %7348 = vmatprep.mubr.msk.f32.mxu1 %vm7996_vm2, %v7995_v38  ;;  %7363 = vmatprep.mubr.msk.f32.mxu0 %vm7996_vm2, %v7995_v38 }
 0x249   : > { %7356 = vmatprep.subr.mxu1 %v7995_v38 }
 0x24a   : > { %7349 = vmatmul.mubr.msk.f32.vlgmr.msra.gmra.mrb[10].mxu1 %vm477_vm3, %v8137_v56 }
 0x24b   : > { %7358 = vmatprep.mubr.msk.f32.mxu1 %vm7996_vm2, %v7995_v38 }
 0x30a   : > { %v8189_v1 = vpop.f32.mrb[10].mxu0 }
 0x30b   : > { %v7320_v2 = vpop.f32.mrb[11].mxu0  ;;  %v1091_v61 = vsel %vm477_vm3, %v8189_v1, -inf }
 0x30e   : > { %v625_v3 = vpop.f32.mrb[12].mxu0 }
 0x30f   : > { %v7325_v4 = vpop.f32.mrb[13].mxu0  ;;  %v1094_v5 = vsel %vm477_vm3, %v625_v3, -inf }
 0x310   : > { %1095 = vmax.xlane.f32.xlu0 %v1094_v5 }
 0x312   : > { %v779_v6 = vpop.f32.mrb[14].mxu0 }
 0x313   : > { %v7335_v7 = vpop.f32.mrb[15].mxu0  ;;  %v1100_v8 = vsel %vm477_vm3, %v779_v6, -inf }
 0x314   : > { %1101 = vmax.xlane.f32.xlu1 %v1100_v8 }
 0x315   : > { %v8193_v9 = vpop.f32.mrb[6].mxu1 }
 0x316   : > { %v7330_v10 = vpop.f32.mrb[7].mxu1  ;;  %v933_v11 = vpop.f32.mrb[16].mxu0  ;;  %v1097_v60 = vsel %vm477_vm3, %v8193_v9, -inf }
 0x317   : > { %v7345_v12 = vpop.f32.mrb[17].mxu0  ;;  %v1106_v13 = vsel %vm477_vm3, %v933_v11, -inf }
 0x318   : > { %1107 = vmax.xlane.f32.xlu0 %v1106_v13 }
 0x319   : > { %v8196_v14 = vpop.f32.mrb[8].mxu1 }
 0x31a   : > { %v7340_v15 = vpop.f32.mrb[9].mxu1  ;;  %v1087_v16 = vpop.f32.mrb[18].mxu0  ;;  %v1103_v62 = vsel %vm477_vm3, %v8196_v14, -inf }
 0x31b   : > { %v7355_v17 = vpop.f32.mrb[19].mxu0  ;;  %v1112_v19 = vsel %vm477_vm3, %v1087_v16, -inf }
 0x31c   : > { %1113 = vmax.xlane.f32.xlu0 %v1112_v19 }
 0x31d   : > { %v8199_v20 = vpop.f32.mrb[10].mxu1 }
 0x31e   : > { %v7350_v21 = vpop.f32.mrb[11].mxu1  ;;  %v1109_v63 = vsel %vm477_vm3, %v8199_v20, -inf }
 0x325   : > { %1255 = vrot.lane.b32.xlu1 %v8122_v47, %s7998_s9 }
 0x39d   : > { %v1096_v22 = vpop.xlane.xlu0 %1095 }
 0x39e   : > { %v1116_v23 = vsub.f32 %v625_v3, %v1096_v22 }
 0x3a0   : > { %v1125_v26 = vmul.f32 1.442695, %v1116_v23 }
 0x3a1   : > { %v1102_v28 = vpop.xlane.xlu1 %1101 }
 0x3a2   : > { %7825 = vpow2.f32 %v1125_v26  ;;  %v1118_v30 = vsub.f32 %v779_v6, %v1102_v28 }
 0x3a4   : > { %v1129_v32 = vmul.f32 1.442695, %v1118_v30 }
 0x3a5   : > { %v1256_v34 = vpop.permute.xlu1 %1255  ;;  %v1108_v42 = vpop.xlane.xlu0 %1107 }
 0x3a6   : > { %7827 = vpow2.f32 %v1129_v32  ;;  %7362 = vmatpush3.msra.mxu0 %v1256_v34  ;;  %v1120_v44 = vsub.f32 %v933_v11, %v1108_v42 }
 0x3a7   : > { %7371 = vmatprep.subr.mxu0 %v7995_v38 }
 0x3a8   : > { %v1133_v48 = vmul.f32 1.442695, %v1120_v44 }
 0x3a9   : > { %v1114_v46 = vpop.xlane.xlu0 %1113 }
 0x3aa   : > { %v1122_v50 = vsub.f32 %v1087_v16, %v1114_v46  ;;  %7829 = vpow2.f32 %v1133_v48 }
 0x3ac   : > { %v7826_v36 = vpop.eup %7825  ;;  %v1137_v51 = vmul.f32 1.442695, %v1122_v50 }
 0x3ad   : > { %v1142_v39 = vsel %vm477_vm3, %v7826_v36, 0.0 }
 0x3ae   : > { %1143 = vadd.xlane.f32.xlu1 %v1142_v39  ;;  %7831 = vpow2.f32 %v1137_v51 }
 0x3b0   : > { %v7828_v40 = vpop.eup %7827 }
 0x3b1   : > { %v1148_v41 = vsel %vm477_vm3, %v7828_v40, 0.0 }
 0x3b2   : > { %1149 = vadd.xlane.f32.xlu0 %v1148_v41 }
 0x3b4   : > { %v7830_v54 = vpop.eup %7829 }
 0x3b5   : > { %v1154_v57 = vsel %vm477_vm3, %v7830_v54, 0.0 }
 0x3b8   : > { %v7832_v58 = vpop.eup %7831 }
 0x3b9   : > { %v1160_v59 = vsel %vm477_vm3, %v7832_v58, 0.0 }
 0x3bf   : > { %1559 = vrot.lane.b32.xlu1 %v8126_v49, %s7998_s9 }
 0x3c8   : > { %1407 = vrot.lane.b32.xlu0 %v8120_v45, %s7998_s9 }
 0x3e3   : > { %1155 = vadd.xlane.f32.xlu1 %v1154_v57 }
 0x3e7   : > { %1161 = vadd.xlane.f32.xlu0 %v1160_v59 }
 0x3f4   : > { %1711 = vrot.lane.b32.xlu1 %v8131_v53, %s7998_s9 }
 0x3f8   : > { %1865 = vrot.lane.b32.xlu1 %v8122_v47, %s7999_s10 }
 0x3fc   : > { %2021 = vrot.lane.b32.xlu1 %v8120_v45, %s7999_s10 }
 0x3fd   : > { %1867 = vrot.lane.b32.xlu0 %v8122_v47, %s8000_s11 }
 0x400   : > { %2177 = vrot.lane.b32.xlu1 %v8126_v49, %s7999_s10 }
 0x401   : > { %2023 = vrot.lane.b32.xlu0 %v8120_v45, %s8000_s11 }
 0x404   : > { %2333 = vrot.lane.b32.xlu1 %v8131_v53, %s7999_s10 }
 0x405   : > { %2179 = vrot.lane.b32.xlu0 %v8126_v49, %s8000_s11 }
 0x409   : > { %2335 = vrot.lane.b32.xlu0 %v8131_v53, %s8000_s11 }
 0x428   : > { %1098 = vmax.xlane.f32.xlu1 %v1097_v60  ;;  %1092 = vmax.xlane.f32.xlu0 %v1091_v61 }
 0x42c   : > { %1104 = vmax.xlane.f32.xlu0 %v1103_v62 }
 0x430   : > { %1110 = vmax.xlane.f32.xlu0 %v1109_v63 }
 0x43b   : > { %v1144_v0 = vpop.xlane.xlu1 %1143 }
 0x43c   : > { %7833 = vrcp.f32 %v1144_v0 }
 0x43f   : > { %v1150_v2 = vpop.xlane.xlu0 %1149  ;;  %v1560_v8 = vpop.permute.xlu1 %1559 }
 0x440   : > { %7835 = vrcp.f32 %v1150_v2 }
 0x443   : > { %v1408_v5 = vpop.permute.xlu0 %1407 }
 0x446   : > { %v7834_v3 = vpop.eup %7833 }
 0x447   : > { %v1172_v4 = vmul.f32 %v7834_v3, %v7826_v36 }
 0x449   : > { %7364 = vmatmul.mubr.msk.f32.vlgmr.msra.gmra.mrb[20].mxu0 %vm477_vm3, %v1172_v4 }
 0x44a   : > { %v7836_v6 = vpop.eup %7835  ;;  %7372 = vmatpush3.msra.mxu0 %v1408_v5  ;;  %7373 = vmatprep.mubr.msk.f32.mxu0 %vm7996_vm2, %v7995_v38 }
 0x44b   : > { %7381 = vmatprep.subr.mxu0 %v7995_v38  ;;  %v1174_v7 = vmul.f32 %v7836_v6, %v7828_v40 }
 0x44d   : > { %7374 = vmatmul.mubr.msk.f32.vlgmr.msra.gmra.mrb[22].mxu0 %vm477_vm3, %v1174_v7 }
 0x44e   : > { %7382 = vmatpush3.msra.mxu0 %v1560_v8  ;;  %7383 = vmatprep.mubr.msk.f32.mxu0 %vm7996_vm2, %v7995_v38 }
 0x44f   : > { %7391 = vmatprep.subr.mxu0 %v7995_v38 }
 0x470   : > { %v1156_v10 = vpop.xlane.xlu1 %1155 }
 0x471   : > { %7837 = vrcp.f32 %v1156_v10 }
 0x474   : > { %v1162_v11 = vpop.xlane.xlu0 %1161  ;;  %v1712_v13 = vpop.permute.xlu1 %1711 }
 0x475   : > { %7839 = vrcp.f32 %v1162_v11 }
 0x478   : > { %v1868_v17 = vpop.permute.xlu0 %1867  ;;  %v1866_v21 = vpop.permute.xlu1 %1865 }
 0x47b   : > { %v7838_v12 = vpop.eup %7837 }
 0x47c   : > { %v1176_v15 = vmul.f32 %v7838_v12, %v7830_v54  ;;  %v2024_v22 = vpop.permute.xlu0 %2023  ;;  %v2022_v23 = vpop.permute.xlu1 %2021 }
 0x47e   : > { %7384 = vmatmul.mubr.msk.f32.vlgmr.msra.gmra.mrb[24].mxu0 %vm477_vm3, %v1176_v15 }
 0x47f   : > { %v7840_v16 = vpop.eup %7839  ;;  %7392 = vmatpush3.msra.mxu0 %v1712_v13  ;;  %7393 = vmatprep.mubr.msk.f32.mxu0 %vm7996_vm2, %v7995_v38 }
 0x480   : > { %v1178_v19 = vmul.f32 %v7840_v16, %v7832_v58  ;;  %7401 = vmatprep.subr.mxu0 %v7995_v38  ;;  %v2180_v26 = vpop.permute.xlu0 %2179  ;;  %v2178_v28 = vpop.permute.xlu1 %2177 }
 0x482   : > { %7394 = vmatmul.mubr.msk.f32.vlgmr.msra.gmra.mrb[26].mxu0 %vm477_vm3, %v1178_v19 }
 0x483   : > { %7403 = vmatprep.mubr.msk.f32.mxu0 %vm7996_vm2, %v7995_v38 }
 0x484   : > { %v2336_v30 = vpop.permute.xlu0 %2335  ;;  %v2334_v32 = vpop.permute.xlu1 %2333 }
 0x486   : > { %7402 = vmatpush3.xpose.msk.msra.mxu0 %vm477_vm3, %v1868_v17 }
 0x487   : > { %7411 = vmatprep.subr.mxu0 %v7995_v38 }
 0x489   : > { %7404 = vmatmul.mubr.msk.f32.vlgmr.msra.gmra.mrb[28].mxu0 %vm477_vm3, %v1866_v21 }
 0x48a   : > { %7412 = vmatpush3.xpose.msk.msra.mxu0 %vm477_vm3, %v2024_v22  ;;  %7413 = vmatprep.mubr.msk.f32.mxu0 %vm7996_vm2, %v7995_v38 }
 0x48b   : > { %7421 = vmatprep.subr.mxu0 %v7995_v38 }
 0x48d   : > { %7414 = vmatmul.mubr.msk.f32.vlgmr.msra.gmra.mrb[30].mxu0 %vm477_vm3, %v2022_v23 }
 0x48e   : > { %7422 = vmatpush3.xpose.msk.msra.mxu0 %vm477_vm3, %v2180_v26  ;;  %7423 = vmatprep.mubr.msk.f32.mxu0 %vm7996_vm2, %v7995_v38 }
 0x48f   : > { %7431 = vmatprep.subr.mxu0 %v7995_v38 }
 0x491   : > { %7424 = vmatmul.mubr.msk.f32.vlgmr.msra.gmra.mrb[32].mxu0 %vm477_vm3, %v2178_v28 }
 0x492   : > { %7432 = vmatpush3.xpose.msk.msra.mxu0 %vm477_vm3, %v2336_v30  ;;  %7433 = vmatprep.mubr.msk.f32.mxu0 %vm7996_vm2, %v7995_v38 }
 0x493   : > { %7441 = vmatprep.subr.mxu0 %v7995_v38 }
 0x495   : > { %7434 = vmatmul.mubr.msk.f32.vlgmr.msra.gmra.mrb[34].mxu0 %vm477_vm3, %v2334_v32 }
 0x496   : > { %7443 = vmatprep.mubr.msk.f32.mxu0 %vm7996_vm2, %v7995_v38 }
 0x4b5   : > { %v1099_v34 = vpop.xlane.xlu1 %1098  ;;  %v1093_v36 = vpop.xlane.xlu0 %1092 }
 0x4b6   : > { %v1117_v39 = vsub.f32 %v8193_v9, %v1099_v34  ;;  %v1115_v40 = vsub.f32 %v8189_v1, %v1093_v36 }
 0x4b8   : > { %v1127_v41 = vmul.f32 1.442695, %v1117_v39  ;;  %v1123_v42 = vmul.f32 1.442695, %v1115_v40 }
 0x4b9   : > { %v1105_v44 = vpop.xlane.xlu0 %1104 }
 0x4ba   : > { %7841 = vpow2.f32 %v1127_v41  ;;  %v1119_v46 = vsub.f32 %v8196_v14, %v1105_v44 }
 0x4bb   : > { %7843 = vpow2.f32 %v1123_v42 }
 0x4bc   : > { %v1131_v48 = vmul.f32 1.442695, %v1119_v46 }
 0x4bd   : > { %v1111_v50 = vpop.xlane.xlu0 %1110 }
 0x4be   : > { %7845 = vpow2.f32 %v1131_v48  ;;  %v1121_v51 = vsub.f32 %v8199_v20, %v1111_v50 }
 0x4c0   : > { %v1135_v54 = vmul.f32 1.442695, %v1121_v51 }
 0x4c2   : > { %7847 = vpow2.f32 %v1135_v54 }
 0x4c4   : > { %v7842_v57 = vpop.eup %7841 }
 0x4c5   : > { %v7844_v58 = vpop.eup %7843  ;;  %v1145_v9 = vsel %vm477_vm3, %v7842_v57, 0.0 }
 0x4c6   : > { %1146 = vadd.xlane.f32.xlu0 %v1145_v9  ;;  %v1139_v1 = vsel %vm477_vm3, %v7844_v58, 0.0 }
 0x4c7   : > { %1140 = vadd.xlane.f32.xlu1 %v1139_v1 }
 0x4c8   : > { %v8279_v59 = vpop.eup %7845 }
 0x4c9   : > { %v1151_v14 = vsel %vm477_vm3, %v8279_v59, 0.0 }
 0x4cb   : > { %1152 = vadd.xlane.f32.xlu1 %v1151_v14 }
 0x4cc   : > { %v8283_v60 = vpop.eup %7847 }
 0x4cd   : > { %v1157_v20 = vsel %vm477_vm3, %v8283_v60, 0.0 }
 0x4ce   : > { %1158 = vadd.xlane.f32.xlu0 %v1157_v20 }
 0x4dc   : > { %1179 = vrot.lane.b32.xlu1 %v8117_v43, %s7998_s9 }
 0x4e0   : > { %1483 = vrot.lane.b32.xlu1 %v8133_v55, %s7998_s9 }
 0x4e4   : > { %1635 = vrot.lane.b32.xlu1 %v8137_v56, %s7998_s9  ;;  %1331 = vrot.lane.b32.xlu0 %v8129_v52, %s7998_s9  ;;  %s9115_s9 = scalar_lea.vmem %s9158_s3, %s6901_s27 }
 0x4e8   : > { %1787 = vrot.lane.b32.xlu1 %v8117_v43, %s7999_s10  ;;  %1789 = vrot.lane.b32.xlu0 %v8117_v43, %s8000_s11 }
 0x4ec   : > { %1943 = vrot.lane.b32.xlu1 %v8129_v52, %s7999_s10  ;;  %1945 = vrot.lane.b32.xlu0 %v8129_v52, %s8000_s11 }
 0x4f0   : > { %2099 = vrot.lane.b32.xlu1 %v8133_v55, %s7999_s10  ;;  %2101 = vrot.lane.b32.xlu0 %v8133_v55, %s8000_s11 }
 0x4f4   : > { %2255 = vrot.lane.b32.xlu1 %v8137_v56, %s7999_s10  ;;  %2257 = vrot.lane.b32.xlu0 %v8137_v56, %s8000_s11 }
 0x51c   : > { %v8311_v61 = vpop.f32.mrb[20].mxu0 }
 0x51d   : > { %v7365_v62 = vpop.f32.mrb[21].mxu0 }
 0x520   : > { %v8313_v63 = vpop.f32.mrb[22].mxu0 }
 0x521   : > { %v7375_v0 = vpop.f32.mrb[23].mxu0 }
 0x551   : > { %v8315_v2 = vpop.f32.mrb[24].mxu0 }
 0x552   : > { %v7385_v3 = vpop.f32.mrb[25].mxu0 }
 0x553   : > { %v1147_v5 = vpop.xlane.xlu0 %1146 }
 0x554   : > { %v1141_v4 = vpop.xlane.xlu1 %1140 }
 0x555   : > { %7849 = vrcp.f32 %v1141_v4  ;;  %v8317_v6 = vpop.f32.mrb[26].mxu0 }
 0x556   : > { %v7395_v7 = vpop.f32.mrb[27].mxu0  ;;  %7851 = vrcp.f32 %v1147_v5 }
 0x558   : > { %v1153_v8 = vpop.xlane.xlu1 %1152 }
 0x559   : > { %7853 = vrcp.f32 %v1153_v8 }
 0x55b   : > { %v1159_v10 = vpop.xlane.xlu0 %1158 }
 0x55c   : > { %v8319_v11 = vpop.f32.mrb[28].mxu0  ;;  %v1180_v12 = vpop.permute.xlu1 %1179  ;;  %7855 = vrcp.f32 %v1159_v10 }
 0x55d   : > { %7357 = vmatpush3.msra.mxu1 %v1180_v12  ;;  %v7405_v13 = vpop.f32.mrb[29].mxu0  ;;  %v2414_v15 = vsel %vm477_vm3, %v8319_v11, -inf }
 0x55e   : > { %2415 = vmax.xlane.f32.xlu0 %v2414_v15  ;;  %7366 = vmatprep.subr.mxu1 %v7995_v38 }
 0x55f   : > { %v7850_v16 = vpop.eup %7849  ;;  %v1332_v19 = vpop.permute.xlu0 %1331 }
 0x560   : > { %v8324_v17 = vpop.f32.mrb[30].mxu0  ;;  %v1171_v21 = vmul.f32 %v7850_v16, %v7844_v58  ;;  %v7852_v22 = vpop.eup %7851 }
 0x561   : > { %v7415_v23 = vpop.f32.mrb[31].mxu0  ;;  %v2420_v26 = vsel %vm477_vm3, %v8324_v17, -inf  ;;  %v1484_v28 = vpop.permute.xlu1 %1483  ;;  %v1173_v32 = vmul.f32 %v7852_v22, %v7842_v57 }
 0x562   : > { %2421 = vmax.xlane.f32.xlu1 %v2420_v26  ;;  %7359 = vmatmul.mubr.msk.f32.vlgmr.msra.gmra.mrb[12].mxu1 %vm477_vm3, %v1171_v21 }
 0x563   : > { %7367 = vmatpush3.msra.mxu1 %v1332_v19  ;;  %7368 = vmatprep.mubr.msk.f32.mxu1 %vm7996_vm2, %v7995_v38  ;;  %v7854_v34 = vpop.eup %7853  ;;  %v1790_v50 = vpop.permute.xlu0 %1789 }
 0x564   : > { %v8331_v30 = vpop.f32.mrb[32].mxu0  ;;  %7376 = vmatprep.subr.mxu1 %v7995_v38  ;;  %v1175_v42 = vmul.f32 %v7854_v34, %v8279_v59 }
 0x565   : > { %v7425_v36 = vpop.f32.mrb[33].mxu0  ;;  %v2426_v39 = vsel %vm477_vm3, %v8331_v30, -inf  ;;  %v1636_v40 = vpop.permute.xlu1 %1635 }
 0x566   : > { %2427 = vmax.xlane.f32.xlu0 %v2426_v39  ;;  %7369 = vmatmul.mubr.msk.f32.vlgmr.msra.gmra.mrb[14].mxu1 %vm477_vm3, %v1173_v32  ;;  %v7856_v44 = vpop.eup %7855 }
 0x567   : > { %7377 = vmatpush3.msra.mxu1 %v1484_v28  ;;  %7378 = vmatprep.mubr.msk.f32.mxu1 %vm7996_vm2, %v7995_v38  ;;  %v1177_v51 = vmul.f32 %v7856_v44, %v8283_v60  ;;  %v1946_v57 = vpop.permute.xlu0 %1945 }
 0x568   : > { %v8339_v41 = vpop.f32.mrb[34].mxu0  ;;  %7386 = vmatprep.subr.mxu1 %v7995_v38 }
 0x569   : > { %v7435_v46 = vpop.f32.mrb[35].mxu0  ;;  %v2432_v48 = vsel %vm477_vm3, %v8339_v41, -inf  ;;  %v1788_v54 = vpop.permute.xlu1 %1787 }
 0x56a   : > { %2433 = vmax.xlane.f32.xlu0 %v2432_v48  ;;  %7379 = vmatmul.mubr.msk.f32.vlgmr.msra.gmra.mrb[16].mxu1 %vm477_vm3, %v1175_v42 }
 0x56b   : > { %7387 = vmatpush3.msra.mxu1 %v1636_v40  ;;  %7388 = vmatprep.mubr.msk.f32.mxu1 %vm7996_vm2, %v7995_v38  ;;  %v2102_v9 = vpop.permute.xlu0 %2101 }
 0x56c   : > { %7396 = vmatprep.subr.mxu1 %v7995_v38 }
 0x56d   : > { %v1944_v58 = vpop.permute.xlu1 %1943 }
 0x56e   : > { %7389 = vmatmul.mubr.msk.f32.vlgmr.msra.gmra.mrb[18].mxu1 %vm477_vm3, %v1177_v51 }
 0x56f   : > { %7398 = vmatprep.mubr.msk.f32.mxu1 %vm7996_vm2, %v7995_v38  ;;  %v2258_v59 = vpop.permute.xlu0 %2257 }
 0x571   : > { %v2100_v1 = vpop.permute.xlu1 %2099 }
 0x572   : > { %7397 = vmatpush3.xpose.msk.msra.mxu1 %vm477_vm3, %v1790_v50 }
 0x573   : > { %2575 = vrot.lane.b32.xlu1 %v8122_v47, %s8001_s13  ;;  %7406 = vmatprep.subr.mxu1 %v7995_v38 }
 0x575   : > { %7399 = vmatmul.mubr.msk.f32.vlgmr.msra.gmra.mrb[20].mxu1 %vm477_vm3, %v1788_v54  ;;  %v2256_v14 = vpop.permute.xlu1 %2255 }
 0x576   : > { %7407 = vmatpush3.xpose.msk.msra.mxu1 %vm477_vm3, %v1946_v57  ;;  %7408 = vmatprep.mubr.msk.f32.mxu1 %vm7996_vm2, %v7995_v38 }
 0x577   : > { %2879 = vrot.lane.b32.xlu1 %v8126_v49, %s8001_s13  ;;  %7416 = vmatprep.subr.mxu1 %v7995_v38 }
 0x579   : > { %7409 = vmatmul.mubr.msk.f32.vlgmr.msra.gmra.mrb[22].mxu1 %vm477_vm3, %v1944_v58 }
 0x57a   : > { %7417 = vmatpush3.xpose.msk.msra.mxu1 %vm477_vm3, %v2102_v9  ;;  %7418 = vmatprep.mubr.msk.f32.mxu1 %vm7996_vm2, %v7995_v38 }
 0x57b   : > { %7426 = vmatprep.subr.mxu1 %v7995_v38 }
 0x57d   : > { %7419 = vmatmul.mubr.msk.f32.vlgmr.msra.gmra.mrb[24].mxu1 %vm477_vm3, %v2100_v1 }
 0x57e   : > { %7427 = vmatpush3.xpose.msk.msra.mxu1 %vm477_vm3, %v2258_v59  ;;  %7428 = vmatprep.mubr.msk.f32.mxu1 %vm7996_vm2, %v7995_v38 }
 0x57f   : > { %7436 = vmatprep.subr.mxu1 %v7995_v38 }
 0x580   : > { %2727 = vrot.lane.b32.xlu0 %v8120_v45, %s8001_s13 }
 0x581   : > { %7429 = vmatmul.mubr.msk.f32.vlgmr.msra.gmra.mrb[26].mxu1 %vm477_vm3, %v2256_v14 }
 0x582   : > { %7438 = vmatprep.mubr.msk.f32.mxu1 %vm7996_vm2, %v7995_v38 }
 0x5eb   : > { %v2416_v60 = vpop.xlane.xlu0 %2415 }
 0x5ec   : > { %v2436_v20 = vsub.f32 %v8319_v11, %v2416_v60 }
 0x5ee   : > { %v2445_v62 = vmul.f32 1.442695, %v2436_v20 }
 0x5ef   : > { %v2422_v0 = vpop.xlane.xlu1 %2421 }
 0x5f0   : > { %7857 = vpow2.f32 %v2445_v62  ;;  %v2438_v3 = vsub.f32 %v8324_v17, %v2422_v0 }
 0x5f2   : > { %v2449_v4 = vmul.f32 1.442695, %v2438_v3 }
 0x5f3   : > { %v2576_v5 = vpop.permute.xlu1 %2575  ;;  %v2428_v7 = vpop.xlane.xlu0 %2427 }
 0x5f4   : > { %7859 = vpow2.f32 %v2449_v4  ;;  %v2440_v8 = vsub.f32 %v8331_v30, %v2428_v7  ;;  %7442 = vmatpush3.msra.mxu0 %v2576_v5 }
 0x5f5   : > { %7451 = vmatprep.subr.mxu0 %v7995_v38 }
 0x5f6   : > { %v2453_v10 = vmul.f32 1.442695, %v2440_v8 }
 0x5f7   : > { %v2434_v19 = vpop.xlane.xlu0 %2433  ;;  %v2880_v1 = vpop.permute.xlu1 %2879 }
 0x5f8   : > { %7861 = vpow2.f32 %v2453_v10  ;;  %v2442_v21 = vsub.f32 %v8339_v41, %v2434_v19 }
 0x5fa   : > { %v8383_v12 = vpop.eup %7857  ;;  %v2457_v22 = vmul.f32 1.442695, %v2442_v21 }
 0x5fb   : > { %v2462_v11 = vsel %vm477_vm3, %v8383_v12, 0.0  ;;  %v2728_v14 = vpop.permute.xlu0 %2727 }
 0x5fc   : > { %2463 = vadd.xlane.f32.xlu1 %v2462_v11  ;;  %7863 = vpow2.f32 %v2457_v22 }
 0x5fe   : > { %v8387_v13 = vpop.eup %7859 }
 0x5ff   : > { %v2468_v15 = vsel %vm477_vm3, %v8387_v13, 0.0 }
 0x600   : > { %2469 = vadd.xlane.f32.xlu0 %v2468_v15 }
 0x602   : > { %v8391_v16 = vpop.eup %7861 }
 0x603   : > { %v2474_v17 = vsel %vm477_vm3, %v8391_v16, 0.0 }
 0x604   : > { %2475 = vadd.xlane.f32.xlu1 %v2474_v17 }
 0x606   : > { %v8409_v23 = vpop.eup %7863 }
 0x607   : > { %v2480_v30 = vsel %vm477_vm3, %v8409_v23, 0.0 }
 0x615   : > { %3031 = vrot.lane.b32.xlu1 %v8131_v53, %s8001_s13 }
 0x616   : > { %3367 = vrot.lane.b32.xlu0 %v8117_v43, %s8002_s14 }
 0x619   : > { %3365 = vrot.lane.b32.xlu1 %v8117_v43, %s8003_s15 }
 0x61a   : > { %3445 = vrot.lane.b32.xlu0 %v8122_v47, %s8002_s14 }
 0x61d   : > { %3443 = vrot.lane.b32.xlu1 %v8122_v47, %s8003_s15 }
 0x621   : > { %3521 = vrot.lane.b32.xlu1 %v8129_v52, %s8003_s15 }
 0x625   : > { %3599 = vrot.lane.b32.xlu1 %v8120_v45, %s8003_s15 }
 0x629   : > { %3677 = vrot.lane.b32.xlu1 %v8133_v55, %s8003_s15 }
 0x62d   : > { %3755 = vrot.lane.b32.xlu1 %v8126_v49, %s8003_s15 }
 0x631   : > { %3833 = vrot.lane.b32.xlu1 %v8137_v56, %s8003_s15 }
 0x635   : > { %v8411_v26 = vpop.f32.mrb[12].mxu1  ;;  %3911 = vrot.lane.b32.xlu1 %v8131_v53, %s8003_s15 }
 0x636   : > { %v7360_v28 = vpop.f32.mrb[13].mxu1 }
 0x639   : > { %v8416_v32 = vpop.f32.mrb[14].mxu1  ;;  %2481 = vadd.xlane.f32.xlu0 %v2480_v30 }
 0x63a   : > { %v7370_v34 = vpop.f32.mrb[15].mxu1 }
 0x63d   : > { %v8418_v36 = vpop.f32.mrb[16].mxu1 }
 0x63e   : > { %v7380_v39 = vpop.f32.mrb[17].mxu1 }
 0x641   : > { %v8420_v40 = vpop.f32.mrb[18].mxu1 }
 0x642   : > { %v7390_v41 = vpop.f32.mrb[19].mxu1 }
 0x648   : > { %v8422_v42 = vpop.f32.mrb[20].mxu1 }
 0x649   : > { %v7400_v44 = vpop.f32.mrb[21].mxu1  ;;  %v2411_v9 = vsel %vm477_vm3, %v8422_v42, -inf }
 0x64c   : > { %v8424_v46 = vpop.f32.mrb[22].mxu1 }
 0x64d   : > { %v7410_v48 = vpop.f32.mrb[23].mxu1  ;;  %v2417_v58 = vsel %vm477_vm3, %v8424_v46, -inf }
 0x64f   : > { %3523 = vrot.lane.b32.xlu0 %v8129_v52, %s8002_s14 }
 0x650   : > { %v8428_v50 = vpop.f32.mrb[24].mxu1 }
 0x651   : > { %v7420_v51 = vpop.f32.mrb[25].mxu1  ;;  %v2423_v59 = vsel %vm477_vm3, %v8428_v50, -inf }
 0x653   : > { %3601 = vrot.lane.b32.xlu0 %v8120_v45, %s8002_s14 }
 0x654   : > { %v8432_v54 = vpop.f32.mrb[26].mxu1 }
 0x655   : > { %v7430_v57 = vpop.f32.mrb[27].mxu1  ;;  %v2429_v20 = vsel %vm477_vm3, %v8432_v54, -inf }
 0x657   : > { %3679 = vrot.lane.b32.xlu0 %v8133_v55, %s8002_s14 }
 0x659   : > { %2418 = vmax.xlane.f32.xlu1 %v2417_v58 }
 0x65b   : > { %3757 = vrot.lane.b32.xlu0 %v8126_v49, %s8002_s14 }
 0x65f   : > { %3835 = vrot.lane.b32.xlu0 %v8137_v56, %s8002_s14 }
 0x663   : > { %3913 = vrot.lane.b32.xlu0 %v8131_v53, %s8002_s14 }
 0x682   : > { %2412 = vmax.xlane.f32.xlu0 %v2411_v9 }
 0x686   : > { %2424 = vmax.xlane.f32.xlu0 %v2423_v59 }
 0x689   : > { %v2464_v60 = vpop.xlane.xlu1 %2463 }
 0x68a   : > { %7865 = vrcp.f32 %v2464_v60  ;;  %2430 = vmax.xlane.f32.xlu0 %v2429_v20 }
 0x68d   : > { %v2470_v62 = vpop.xlane.xlu0 %2469 }
 0x68e   : > { %7867 = vrcp.f32 %v2470_v62 }
 0x691   : > { %v2476_v0 = vpop.xlane.xlu1 %2475 }
 0x692   : > { %7869 = vrcp.f32 %v2476_v0 }
 0x694   : > { %v7866_v3 = vpop.eup %7865 }
 0x695   : > { %v2492_v4 = vmul.f32 %v7866_v3, %v8383_v12  ;;  %v3032_v12 = vpop.permute.xlu1 %3031 }
 0x697   : > { %7444 = vmatmul.mubr.msk.f32.vlgmr.msra.gmra.mrb[36].mxu0 %vm477_vm3, %v2492_v4 }
 0x698   : > { %v7868_v5 = vpop.eup %7867  ;;  %7452 = vmatpush3.msra.mxu0 %v2728_v14  ;;  %7453 = vmatprep.mubr.msk.f32.mxu0 %vm7996_vm2, %v7995_v38 }
 0x699   : > { %7461 = vmatprep.subr.mxu0 %v7995_v38  ;;  %v2494_v7 = vmul.f32 %v7868_v5, %v8387_v13  ;;  %v3366_v11 = vpop.permute.xlu1 %3365  ;;  %v3368_v13 = vpop.permute.xlu0 %3367 }
 0x69b   : > { %7454 = vmatmul.mubr.msk.f32.vlgmr.msra.gmra.mrb[38].mxu0 %vm477_vm3, %v2494_v7 }
 0x69c   : > { %v7870_v8 = vpop.eup %7869  ;;  %7462 = vmatpush3.msra.mxu0 %v2880_v1  ;;  %7463 = vmatprep.mubr.msk.f32.mxu0 %vm7996_vm2, %v7995_v38 }
 0x69d   : > { %7471 = vmatprep.subr.mxu0 %v7995_v38  ;;  %v2496_v10 = vmul.f32 %v7870_v8, %v8391_v16  ;;  %v3444_v15 = vpop.permute.xlu1 %3443  ;;  %v3446_v17 = vpop.permute.xlu0 %3445 }
 0x69f   : > { %7464 = vmatmul.mubr.msk.f32.vlgmr.msra.gmra.mrb[40].mxu0 %vm477_vm3, %v2496_v10 }
 0x6a0   : > { %7472 = vmatpush3.msra.mxu0 %v3032_v12  ;;  %7473 = vmatprep.mubr.msk.f32.mxu0 %vm7996_vm2, %v7995_v38 }
 0x6a1   : > { %7504 = vmatprep.subr.mxu0 %v7995_v38  ;;  %v3522_v19 = vpop.permute.xlu1 %3521 }
 0x6a5   : > { %v3600_v22 = vpop.permute.xlu1 %3599 }
 0x6a9   : > { %v3678_v28 = vpop.permute.xlu1 %3677 }
 0x6ad   : > { %v3756_v39 = vpop.permute.xlu1 %3755 }
 0x6c6   : > { %v2482_v21 = vpop.xlane.xlu0 %2481 }
 0x6c7   : > { %7871 = vrcp.f32 %v2482_v21 }
 0x6ca   : > { %v3524_v16 = vpop.permute.xlu0 %3523 }
 0x6ce   : > { %v3602_v41 = vpop.permute.xlu0 %3601 }
 0x6d1   : > { %v7872_v30 = vpop.eup %7871 }
 0x6d2   : > { %v2498_v34 = vmul.f32 %v7872_v30, %v8409_v23  ;;  %v3834_v23 = vpop.permute.xlu1 %3833  ;;  %v3680_v44 = vpop.permute.xlu0 %3679 }
 0x6d4   : > { %7474 = vmatmul.mubr.msk.f32.vlgmr.msra.gmra.mrb[42].mxu0 %vm477_vm3, %v2498_v34 }
 0x6d5   : > { %7505 = vmatpush3.xpose.msk.msra.mxu0 %vm477_vm3, %v3368_v13  ;;  %7506 = vmatprep.mubr.msk.f32.mxu0 %vm7996_vm2, %v7995_v38 }
 0x6d6   : > { %7509 = vmatprep.subr.mxu0 %v7995_v38  ;;  %v3912_v48 = vpop.permute.xlu1 %3911  ;;  %v3758_v51 = vpop.permute.xlu0 %3757 }
 0x6d8   : > { %7507 = vmatmul.mubr.msk.f32.vlgmr.msra.gmra.mrb[44].mxu0 %vm477_vm3, %v3366_v11 }
 0x6d9   : > { %7510 = vmatpush3.xpose.msk.msra.mxu0 %vm477_vm3, %v3446_v17  ;;  %7511 = vmatprep.mubr.msk.f32.mxu0 %vm7996_vm2, %v7995_v38 }
 0x6da   : > { %7514 = vmatprep.subr.mxu0 %v7995_v38  ;;  %v3836_v1 = vpop.permute.xlu0 %3835 }
 0x6dc   : > { %7512 = vmatmul.mubr.msk.f32.vlgmr.msra.gmra.mrb[46].mxu0 %vm477_vm3, %v3444_v15 }
 0x6dd   : > { %7515 = vmatpush3.xpose.msk.msra.mxu0 %vm477_vm3, %v3524_v16  ;;  %7516 = vmatprep.mubr.msk.f32.mxu0 %vm7996_vm2, %v7995_v38 }
 0x6de   : > { %7519 = vmatprep.subr.mxu0 %v7995_v38 }
 0x6e0   : > { %7517 = vmatmul.mubr.msk.f32.vlgmr.msra.gmra.mrb[48].mxu0 %vm477_vm3, %v3522_v19 }
 0x6e1   : > { %7520 = vmatpush3.xpose.msk.msra.mxu0 %vm477_vm3, %v3602_v41  ;;  %7521 = vmatprep.mubr.msk.f32.mxu0 %vm7996_vm2, %v7995_v38 }
 0x6e2   : > { %7524 = vmatprep.subr.mxu0 %v7995_v38 }
 0x6e4   : > { %7522 = vmatmul.mubr.msk.f32.vlgmr.msra.gmra.mrb[50].mxu0 %vm477_vm3, %v3600_v22 }
 0x6e5   : > { %7525 = vmatpush3.xpose.msk.msra.mxu0 %vm477_vm3, %v3680_v44  ;;  %7526 = vmatprep.mubr.msk.f32.mxu0 %vm7996_vm2, %v7995_v38 }
 0x6e6   : > { %v2419_v57 = vpop.xlane.xlu1 %2418  ;;  %7529 = vmatprep.subr.mxu0 %v7995_v38 }
 0x6e7   : > { %v2437_v58 = vsub.f32 %v8424_v46, %v2419_v57  ;;  %v3914_v46 = vpop.permute.xlu0 %3913 }
 0x6e8   : > { %7527 = vmatmul.mubr.msk.f32.vlgmr.msra.gmra.mrb[52].mxu0 %vm477_vm3, %v3678_v28 }
 0x6e9   : > { %v2447_v9 = vmul.f32 1.442695, %v2437_v58  ;;  %7530 = vmatpush3.xpose.msk.msra.mxu0 %vm477_vm3, %v3758_v51  ;;  %7531 = vmatprep.mubr.msk.f32.mxu0 %vm7996_vm2, %v7995_v38 }
 0x6ea   : > { %7534 = vmatprep.subr.mxu0 %v7995_v38 }
 0x6eb   : > { %7873 = vpow2.f32 %v2447_v9 }
 0x6ec   : > { %7532 = vmatmul.mubr.msk.f32.vlgmr.msra.gmra.mrb[54].mxu0 %vm477_vm3, %v3756_v39 }
 0x6ed   : > { %7535 = vmatpush3.xpose.msk.msra.mxu0 %vm477_vm3, %v3836_v1  ;;  %7536 = vmatprep.mubr.msk.f32.mxu0 %vm7996_vm2, %v7995_v38 }
 0x6ee   : > { %7539 = vmatprep.subr.mxu0 %v7995_v38 }
 0x6f0   : > { %7537 = vmatmul.mubr.msk.f32.vlgmr.msra.gmra.mrb[56].mxu0 %vm477_vm3, %v3834_v23 }
 0x6f1   : > { %7540 = vmatpush3.xpose.msk.msra.mxu0 %vm477_vm3, %v3914_v46  ;;  %7541 = vmatprep.mubr.msk.f32.mxu0 %vm7996_vm2, %v7995_v38 }
 0x6f2   : > { %7549 = vmatprep.subr.mxu0 %v7995_v38 }
 0x6f4   : > { %7542 = vmatmul.mubr.msk.f32.vlgmr.msra.gmra.mrb[58].mxu0 %vm477_vm3, %v3912_v48 }
 0x6f5   : > { %v8508_v59 = vpop.eup %7873  ;;  %7551 = vmatprep.mubr.msk.f32.mxu0 %vm7996_vm2, %v7995_v38 }
 0x6f6   : > { %v2465_v14 = vsel %vm477_vm3, %v8508_v59, 0.0 }
 0x6f7   : > { %2466 = vadd.xlane.f32.xlu0 %v2465_v14 }
 0x70f   : > { %v2413_v60 = vpop.xlane.xlu0 %2412 }
 0x710   : > { %v2435_v20 = vsub.f32 %v8422_v42, %v2413_v60 }
 0x712   : > { %v2443_v62 = vmul.f32 1.442695, %v2435_v20 }
 0x713   : > { %v2425_v0 = vpop.xlane.xlu0 %2424 }
 0x714   : > { %7875 = vpow2.f32 %v2443_v62  ;;  %v2439_v3 = vsub.f32 %v8428_v50, %v2425_v0 }
 0x716   : > { %v2451_v4 = vmul.f32 1.442695, %v2439_v3 }
 0x717   : > { %v2431_v5 = vpop.xlane.xlu0 %2430 }
 0x718   : > { %7877 = vpow2.f32 %v2451_v4  ;;  %v2441_v7 = vsub.f32 %v8432_v54, %v2431_v5 }
 0x71a   : > { %v2455_v8 = vmul.f32 1.442695, %v2441_v7 }
 0x71c   : > { %7879 = vpow2.f32 %v2455_v8 }
 0x71e   : > { %v7876_v10 = vpop.eup %7875 }
 0x71f   : > { %v2459_v12 = vsel %vm477_vm3, %v7876_v10, 0.0 }
 0x720   : > { %2460 = vadd.xlane.f32.xlu1 %v2459_v12 }
 0x722   : > { %v8518_v11 = vpop.eup %7877 }
 0x723   : > { %v2471_v42 = vsel %vm477_vm3, %v8518_v11, 0.0 }
 0x724   : > { %2472 = vadd.xlane.f32.xlu1 %v2471_v42 }
 0x726   : > { %v8522_v13 = vpop.eup %7879 }
 0x727   : > { %v2477_v50 = vsel %vm477_vm3, %v8522_v13, 0.0 }
 0x728   : > { %2478 = vadd.xlane.f32.xlu0 %v2477_v50 }
 0x735   : > { %2499 = vrot.lane.b32.xlu1 %v8117_v43, %s8001_s13 }
 0x739   : > { %2803 = vrot.lane.b32.xlu1 %v8133_v55, %s8001_s13 }
 0x73d   : > { %2955 = vrot.lane.b32.xlu1 %v8137_v56, %s8001_s13 }
 0x73e   : > { %2651 = vrot.lane.b32.xlu0 %v8129_v52, %s8001_s13 }
 0x76a   : > { %v8534_v54 = vpop.f32.mrb[36].mxu0 }
 0x76b   : > { %v7445_v15 = vpop.f32.mrb[37].mxu0 }
 0x76e   : > { %v8536_v17 = vpop.f32.mrb[38].mxu0 }
 0x76f   : > { %v7455_v19 = vpop.f32.mrb[39].mxu0 }
 0x772   : > { %v8538_v21 = vpop.f32.mrb[40].mxu0 }
 0x773   : > { %v7465_v22 = vpop.f32.mrb[41].mxu0 }
 0x784   : > { %v2467_v41 = vpop.xlane.xlu0 %2466 }
 0x7a7   : > { %v8540_v28 = vpop.f32.mrb[42].mxu0 }
 0x7a8   : > { %v7475_v30 = vpop.f32.mrb[43].mxu0 }
 0x7ab   : > { %v8542_v16 = vpop.f32.mrb[44].mxu0 }
 0x7ac   : > { %v7508_v34 = vpop.f32.mrb[45].mxu0  ;;  %v3989_v39 = vsel %vm477_vm3, %v8542_v16, -inf }
 0x7ad   : > { %v2461_v23 = vpop.xlane.xlu1 %2460  ;;  %3990 = vmax.xlane.f32.xlu0 %v3989_v39 }
 0x7ae   : > { %7881 = vrcp.f32 %v2461_v23 }
 0x7af   : > { %v8546_v44 = vpop.f32.mrb[46].mxu0  ;;  %7883 = vrcp.f32 %v2467_v41 }
 0x7b0   : > { %v7513_v48 = vpop.f32.mrb[47].mxu0  ;;  %v3992_v51 = vsel %vm477_vm3, %v8546_v44, -inf }
 0x7b1   : > { %3993 = vmax.xlane.f32.xlu1 %v3992_v51  ;;  %v2473_v57 = vpop.xlane.xlu1 %2472 }
 0x7b2   : > { %7885 = vrcp.f32 %v2473_v57 }
 0x7b3   : > { %v8550_v58 = vpop.f32.mrb[48].mxu0 }
 0x7b4   : > { %v7518_v9 = vpop.f32.mrb[49].mxu0  ;;  %v3995_v1 = vsel %vm477_vm3, %v8550_v58, -inf }
 0x7b5   : > { %v2500_v46 = vpop.permute.xlu1 %2499  ;;  %3996 = vmax.xlane.f32.xlu0 %v3995_v1  ;;  %v2479_v14 = vpop.xlane.xlu0 %2478  ;;  %v8602_v9 = vld [vmem:[%s9156_s1 + $0x10] sm:$0xff] }
 0x7b6   : > { %7437 = vmatpush3.msra.mxu1 %v2500_v46  ;;  %7887 = vrcp.f32 %v2479_v14 }
 0x7b7   : > { %v8554_v60 = vpop.f32.mrb[50].mxu0  ;;  %7446 = vmatprep.subr.mxu1 %v7995_v38 }
 0x7b8   : > { %v7882_v20 = vpop.eup %7881  ;;  %v7523_v62 = vpop.f32.mrb[51].mxu0  ;;  %v3998_v0 = vsel %vm477_vm3, %v8554_v60, -inf }
 0x7b9   : > { %3999 = vmax.xlane.f32.xlu0 %v3998_v0  ;;  %v2652_v3 = vpop.permute.xlu0 %2651  ;;  %v2491_v4 = vmul.f32 %v7882_v20, %v7876_v10  ;;  %v7884_v5 = vpop.eup %7883 }
 0x7ba   : > { %v2804_v42 = vpop.permute.xlu1 %2803  ;;  %v2493_v50 = vmul.f32 %v7884_v5, %v8508_v59 }
 0x7bb   : > { %7439 = vmatmul.mubr.msk.f32.vlgmr.msra.gmra.mrb[28].mxu1 %vm477_vm3, %v2491_v4  ;;  %v8560_v7 = vpop.f32.mrb[52].mxu0 }
 0x7bc   : > { %7447 = vmatpush3.msra.mxu1 %v2652_v3  ;;  %v7528_v8 = vpop.f32.mrb[53].mxu0  ;;  %v4001_v12 = vsel %vm477_vm3, %v8560_v7, -inf  ;;  %7448 = vmatprep.mubr.msk.f32.mxu1 %vm7996_vm2, %v7995_v38  ;;  %v7886_v10 = vpop.eup %7885 }
 0x7bd   : > { %4002 = vmax.xlane.f32.xlu1 %v4001_v12  ;;  %7456 = vmatprep.subr.mxu1 %v7995_v38  ;;  %v2495_v30 = vmul.f32 %v7886_v10, %v8518_v11 }
 0x7be   : > { %v2956_v59 = vpop.permute.xlu1 %2955 }
 0x7bf   : > { %7449 = vmatmul.mubr.msk.f32.vlgmr.msra.gmra.mrb[30].mxu1 %vm477_vm3, %v2493_v50  ;;  %v8569_v15 = vpop.f32.mrb[54].mxu0 }
 0x7c0   : > { %7457 = vmatpush3.msra.mxu1 %v2804_v42  ;;  %v7533_v19 = vpop.f32.mrb[55].mxu0  ;;  %v4004_v22 = vsel %vm477_vm3, %v8569_v15, -inf  ;;  %7458 = vmatprep.mubr.msk.f32.mxu1 %vm7996_vm2, %v7995_v38  ;;  %v7888_v34 = vpop.eup %7887 }
 0x7c1   : > { %4005 = vmax.xlane.f32.xlu0 %v4004_v22  ;;  %7466 = vmatprep.subr.mxu1 %v7995_v38  ;;  %v2497_v48 = vmul.f32 %v7888_v34, %v8522_v13  ;;  %v185_v13 = vld [vmem:[%s9156_s1 + $0x18] sm:$0xff] }
 0x7c3   : > { %7459 = vmatmul.mubr.msk.f32.vlgmr.msra.gmra.mrb[32].mxu1 %vm477_vm3, %v2495_v30  ;;  %v3907_v39 = vpop.f32.mrb[56].mxu0 }
 0x7c4   : > { %7467 = vmatpush3.msra.mxu1 %v2956_v59  ;;  %v7538_v41 = vpop.f32.mrb[57].mxu0  ;;  %v4007_v23 = vsel %vm477_vm3, %v3907_v39, -inf  ;;  %7468 = vmatprep.mubr.msk.f32.mxu1 %vm7996_vm2, %v7995_v38 }
 0x7c5   : > { %4008 = vmax.xlane.f32.xlu1 %v4007_v23  ;;  %7476 = vmatprep.subr.mxu1 %v185_v13 }
 0x7c7   : > { %7469 = vmatmul.mubr.msk.f32.vlgmr.msra.gmra.mrb[34].mxu1 %vm477_vm3, %v2497_v48  ;;  %v3985_v51 = vpop.f32.mrb[58].mxu0 }
 0x7c8   : > { %v7543_v57 = vpop.f32.mrb[59].mxu0  ;;  %v4010_v11 = vsel %vm477_vm3, %v3985_v51, -inf  ;;  %7477 = vmatpush3.msra.mxu1 %v185_v13 }
 0x7c9   : > { %4011 = vmax.xlane.f32.xlu0 %v4010_v11  ;;  %7490 = vmatprep.subr.mxu1 %v8602_v9 }
 0x7d6   : > { %4077 = vrot.lane.b32.xlu1 %v8117_v43, %s8004_s16 }
 0x7da   : > { %4229 = vrot.lane.b32.xlu1 %v8129_v52, %s8004_s16 }
 0x7de   : > { %4305 = vrot.lane.b32.xlu1 %v8120_v45, %s8004_s16 }
 0x7df   : > { %4153 = vrot.lane.b32.xlu0 %v8122_v47, %s8004_s16 }
 0x7e2   : > { %4457 = vrot.lane.b32.xlu1 %v8126_v49, %s8004_s16 }
 0x7e3   : > { %4381 = vrot.lane.b32.xlu0 %v8133_v55, %s8004_s16 }
 0x83a   : > { %v3991_v1 = vpop.xlane.xlu0 %3990 }
 0x83b   : > { %v4013_v46 = vsub.f32 %v8542_v16, %v3991_v1 }
 0x83d   : > { %v4021_v14 = vmul.f32 1.442695, %v4013_v46 }
 0x83e   : > { %v3994_v20 = vpop.xlane.xlu1 %3993 }
 0x83f   : > { %7889 = vpow2.f32 %v4021_v14  ;;  %v4014_v62 = vsub.f32 %v8546_v44, %v3994_v20 }
 0x841   : > { %v4023_v0 = vmul.f32 1.442695, %v4014_v62 }
 0x842   : > { %v3997_v3 = vpop.xlane.xlu0 %3996 }
 0x843   : > { %7891 = vpow2.f32 %v4023_v0  ;;  %v4015_v4 = vsub.f32 %v8550_v58, %v3997_v3 }
 0x845   : > { %v4025_v5 = vmul.f32 1.442695, %v4015_v4 }
 0x846   : > { %v4000_v8 = vpop.xlane.xlu0 %3999 }
 0x847   : > { %7893 = vpow2.f32 %v4025_v5  ;;  %v4016_v12 = vsub.f32 %v8554_v60, %v4000_v8 }
 0x849   : > { %v8609_v42 = vpop.eup %7889  ;;  %v4027_v50 = vmul.f32 1.442695, %v4016_v12 }
 0x84a   : > { %v4003_v10 = vpop.xlane.xlu1 %4002  ;;  %v4037_v16 = vsel %vm477_vm3, %v8609_v42, 0.0 }
 0x84b   : > { %7895 = vpow2.f32 %v4027_v50  ;;  %v4017_v44 = vsub.f32 %v8560_v7, %v4003_v10  ;;  %4038 = vadd.xlane.f32.xlu1 %v4037_v16 }
 0x84d   : > { %v8614_v19 = vpop.eup %7891  ;;  %v4029_v22 = vmul.f32 1.442695, %v4017_v44 }
 0x84e   : > { %v4006_v58 = vpop.xlane.xlu0 %4005  ;;  %v4040_v30 = vsel %vm477_vm3, %v8614_v19, 0.0 }
 0x84f   : > { %7897 = vpow2.f32 %v4029_v22  ;;  %v4018_v60 = vsub.f32 %v8569_v15, %v4006_v58  ;;  %4041 = vadd.xlane.f32.xlu0 %v4040_v30 }
 0x851   : > { %v8619_v34 = vpop.eup %7893  ;;  %v4031_v59 = vmul.f32 1.442695, %v4018_v60 }
 0x852   : > { %v4009_v41 = vpop.xlane.xlu1 %4008  ;;  %v4043_v23 = vsel %vm477_vm3, %v8619_v34, 0.0 }
 0x853   : > { %7899 = vpow2.f32 %v4031_v59  ;;  %v4019_v7 = vsub.f32 %v3907_v39, %v4009_v41  ;;  %4044 = vadd.xlane.f32.xlu1 %v4043_v23 }
 0x855   : > { %v8623_v48 = vpop.eup %7895  ;;  %v4033_v57 = vmul.f32 1.442695, %v4019_v7 }
 0x856   : > { %v4012_v11 = vpop.xlane.xlu0 %4011  ;;  %v4046_v13 = vsel %vm477_vm3, %v8623_v48, 0.0 }
 0x857   : > { %7901 = vpow2.f32 %v4033_v57  ;;  %v4020_v15 = vsub.f32 %v3985_v51, %v4012_v11  ;;  %4047 = vadd.xlane.f32.xlu0 %v4046_v13  ;;  %v186_v11 = vld [vmem:[%s9156_s1 + $0x20] sm:$0xff] }
 0x859   : > { %v8627_v1 = vpop.eup %7897  ;;  %v4035_v46 = vmul.f32 1.442695, %v4020_v15 }
 0x85a   : > { %v4154_v14 = vpop.permute.xlu0 %4153  ;;  %v4049_v20 = vsel %vm477_vm3, %v8627_v1, 0.0 }
 0x85b   : > { %7903 = vpow2.f32 %v4035_v46  ;;  %4050 = vadd.xlane.f32.xlu1 %v4049_v20  ;;  %7550 = vmatpush3.msra.mxu0 %v4154_v14 }
 0x85c   : > { %7559 = vmatprep.subr.mxu0 %v7995_v38 }
 0x85d   : > { %v8632_v39 = vpop.eup %7899 }
 0x85e   : > { %v4052_v62 = vsel %vm477_vm3, %v8632_v39, 0.0 }
 0x85f   : > { %4053 = vadd.xlane.f32.xlu0 %v4052_v62 }
 0x861   : > { %v8636_v51 = vpop.eup %7901 }
 0x862   : > { %v4055_v0 = vsel %vm477_vm3, %v8636_v51, 0.0 }
 0x863   : > { %4056 = vadd.xlane.f32.xlu1 %v4055_v0 }
 0x865   : > { %v8640_v3 = vpop.eup %7903 }
 0x866   : > { %v4058_v4 = vsel %vm477_vm3, %v8640_v3, 0.0 }
 0x867   : > { %4059 = vadd.xlane.f32.xlu0 %v4058_v4 }
 0x874   : > { %4609 = vrot.lane.b32.xlu1 %v8131_v53, %s8004_s16 }
 0x878   : > { %4822 = vrot.lane.b32.xlu1 %v8117_v43, %s8005_s22 }
 0x87c   : > { %4900 = vrot.lane.b32.xlu1 %v8122_v47, %s8005_s22 }
 0x87d   : > { %4533 = vrot.lane.b32.xlu0 %v8137_v56, %s8004_s16 }
 0x880   : > { %4978 = vrot.lane.b32.xlu1 %v8129_v52, %s8005_s22 }
 0x881   : > { %4824 = vrot.lane.b32.xlu0 %v8117_v43, %s8006_s23 }
 0x884   : > { %5056 = vrot.lane.b32.xlu1 %v8120_v45, %s8005_s22 }
 0x885   : > { %4902 = vrot.lane.b32.xlu0 %v8122_v47, %s8006_s23 }
 0x888   : > { %5214 = vrot.lane.b32.xlu1 %v8126_v49, %s8006_s23 }
 0x889   : > { %4980 = vrot.lane.b32.xlu0 %v8129_v52, %s8006_s23 }
 0x88c   : > { %5212 = vrot.lane.b32.xlu1 %v8126_v49, %s8005_s22 }
 0x88d   : > { %5058 = vrot.lane.b32.xlu0 %v8120_v45, %s8006_s23 }
 0x88e   : > { %v2571_v5 = vpop.f32.mrb[28].mxu1 }
 0x88f   : > { %v7440_v8 = vpop.f32.mrb[29].mxu1  ;;  %7478 = vmatprep.mubr.msk.f32.mxu1 %vm477_vm3, %v2571_v5 }
 0x890   : > { %7479 = vmatmul.mubr.msk.f32.vlgmr.msra.gmra.mrb[36].mxu1 %vm477_vm3, %v8534_v54  ;;  %5370 = vrot.lane.b32.xlu1 %v8131_v53, %s8006_s23 }
 0x891   : > { %5136 = vrot.lane.b32.xlu0 %v8133_v55, %s8006_s23  ;;  %7491 = vmatpush3.msra.mxu1 %v8602_v9 }
 0x892   : > { %v2723_v12 = vpop.f32.mrb[30].mxu1  ;;  %7544 = vmatprep.subr.mxu1 %v7995_v38 }
 0x893   : > { %v7450_v50 = vpop.f32.mrb[31].mxu1  ;;  %7481 = vmatprep.mubr.msk.f32.mxu1 %vm477_vm3, %v2723_v12 }
 0x894   : > { %7482 = vmatmul.mubr.msk.f32.gmra.mrb[38].mxu1 %vm477_vm3, %v8536_v17  ;;  %5368 = vrot.lane.b32.xlu1 %v8131_v53, %s8005_s22  ;;  %v4078_v17 = vpop.permute.xlu1 %4077 }
 0x895   : > { %5134 = vrot.lane.b32.xlu0 %v8133_v55, %s8005_s22 }
 0x896   : > { %v2875_v54 = vpop.f32.mrb[32].mxu1 }
 0x897   : > { %v7460_v10 = vpop.f32.mrb[33].mxu1  ;;  %7484 = vmatprep.mubr.msk.f32.mxu1 %vm477_vm3, %v2875_v54 }
 0x898   : > { %7485 = vmatmul.mubr.msk.f32.gmra.mrb[40].mxu1 %vm477_vm3, %v8538_v21  ;;  %v4382_v21 = vpop.permute.xlu0 %4381 }
 0x899   : > { %5292 = vrot.lane.b32.xlu0 %v8137_v56, %s8006_s23 }
 0x89a   : > { %v3027_v9 = vpop.f32.mrb[34].mxu1 }
 0x89b   : > { %v7470_v16 = vpop.f32.mrb[35].mxu1  ;;  %7487 = vmatprep.mubr.msk.f32.mxu1 %vm477_vm3, %v3027_v9 }
 0x89c   : > { %7488 = vmatmul.mubr.msk.f32.gmra.mrb[42].mxu1 %vm477_vm3, %v8540_v28 }
 0x89d   : > { %7492 = vmatprep.mubr.msk.f32.mxu1 %vm477_vm3, %v8411_v26  ;;  %5290 = vrot.lane.b32.xlu0 %v8137_v56, %s8005_s22 }
 0x8a0   : > { %7493 = vmatmul.mubr.msk.f32.vlgmr.msra.gmra.mrb[36].mxu1 %vm477_vm3, %v8311_v61  ;;  %v4230_v61 = vpop.permute.xlu1 %4229 }
 0x8a1   : > { %7545 = vmatpush3.msra.mxu1 %v4078_v17  ;;  %7495 = vmatprep.mubr.msk.f32.mxu1 %vm477_vm3, %v8416_v32 }
 0x8a2   : > { %7554 = vmatprep.subr.mxu1 %v7995_v38 }
 0x8a4   : > { %7496 = vmatmul.mubr.msk.f32.gmra.mrb[38].mxu1 %vm477_vm3, %v8313_v63  ;;  %v4306_v26 = vpop.permute.xlu1 %4305 }
 0x8a5   : > { %7498 = vmatprep.mubr.msk.f32.mxu1 %vm477_vm3, %v8418_v36 }
 0x8a8   : > { %7499 = vmatmul.mubr.msk.f32.gmra.mrb[40].mxu1 %vm477_vm3, %v8315_v2  ;;  %v4458_v32 = vpop.permute.xlu1 %4457 }
 0x8a9   : > { %7501 = vmatprep.mubr.msk.f32.mxu1 %vm477_vm3, %v8420_v40 }
 0x8ac   : > { %7502 = vmatmul.mubr.msk.f32.gmra.mrb[42].mxu1 %vm477_vm3, %v8317_v6 }
 0x8ad   : > { %7546 = vmatprep.mubr.msk.f32.mxu1 %vm7996_vm2, %v7995_v38 }
 0x8d8   : > { %v4039_v63 = vpop.xlane.xlu1 %4038 }
 0x8d9   : > { %7905 = vrcp.f32 %v4039_v63 }
 0x8dc   : > { %v4042_v28 = vpop.xlane.xlu0 %4041 }
 0x8dd   : > { %7907 = vrcp.f32 %v4042_v28 }
 0x8e0   : > { %v4045_v36 = vpop.xlane.xlu1 %4044 }
 0x8e1   : > { %7909 = vrcp.f32 %v4045_v36 }
 0x8e3   : > { %v7906_v2 = vpop.eup %7905 }
 0x8e4   : > { %v4069_v44 = vmul.f32 %v7906_v2, %v8609_v42  ;;  %v4048_v40 = vpop.xlane.xlu0 %4047 }
 0x8e5   : > { %7911 = vrcp.f32 %v4048_v40 }
 0x8e6   : > { %7547 = vmatmul.mubr.msk.f32.vlgmr.msra.gmra.mrb[44].mxu1 %vm477_vm3, %v4069_v44 }
 0x8e7   : > { %v7908_v6 = vpop.eup %7907  ;;  %7555 = vmatpush3.msra.mxu1 %v4230_v61  ;;  %7556 = vmatprep.mubr.msk.f32.mxu1 %vm7996_vm2, %v7995_v38 }
 0x8e8   : > { %v4070_v22 = vmul.f32 %v7908_v6, %v8614_v19  ;;  %v4051_v58 = vpop.xlane.xlu1 %4050  ;;  %7564 = vmatprep.subr.mxu1 %v7995_v38 }
 0x8e9   : > { %7913 = vrcp.f32 %v4051_v58 }
 0x8ea   : > { %7552 = vmatmul.mubr.msk.f32.vlgmr.msra.gmra.mrb[60].mxu0 %vm477_vm3, %v4070_v22 }
 0x8eb   : > { %v7910_v30 = vpop.eup %7909  ;;  %7560 = vmatpush3.msra.mxu0 %v4306_v26  ;;  %7561 = vmatprep.mubr.msk.f32.mxu0 %vm7996_vm2, %v7995_v38 }
 0x8ec   : > { %v4071_v42 = vmul.f32 %v7910_v30, %v8619_v34  ;;  %v4054_v60 = vpop.xlane.xlu0 %4053  ;;  %7569 = vmatprep.subr.mxu0 %v7995_v38 }
 0x8ed   : > { %7915 = vrcp.f32 %v4054_v60 }
 0x8ee   : > { %7557 = vmatmul.mubr.msk.f32.vlgmr.msra.gmra.mrb[46].mxu1 %vm477_vm3, %v4071_v42 }
 0x8ef   : > { %v7912_v19 = vpop.eup %7911  ;;  %7565 = vmatpush3.msra.mxu1 %v4382_v21  ;;  %7566 = vmatprep.mubr.msk.f32.mxu1 %vm7996_vm2, %v7995_v38 }
 0x8f0   : > { %v4072_v59 = vmul.f32 %v7912_v19, %v8623_v48  ;;  %v4057_v41 = vpop.xlane.xlu1 %4056  ;;  %7574 = vmatprep.subr.mxu1 %v7995_v38 }
 0x8f1   : > { %7917 = vrcp.f32 %v4057_v41 }
 0x8f2   : > { %7562 = vmatmul.mubr.msk.f32.vlgmr.msra.gmra.mrb[62].mxu0 %vm477_vm3, %v4072_v59 }
 0x8f3   : > { %v7914_v34 = vpop.eup %7913  ;;  %7570 = vmatpush3.msra.mxu0 %v4458_v32  ;;  %7571 = vmatprep.mubr.msk.f32.mxu0 %vm7996_vm2, %v7995_v38 }
 0x8f4   : > { %v4073_v23 = vmul.f32 %v7914_v34, %v8627_v1  ;;  %v4610_v7 = vpop.permute.xlu1 %4609  ;;  %v4060_v57 = vpop.xlane.xlu0 %4059  ;;  %7579 = vmatprep.subr.mxu0 %v7995_v38 }
 0x8f5   : > { %7919 = vrcp.f32 %v4060_v57 }
 0x8f6   : > { %7567 = vmatmul.mubr.msk.f32.vlgmr.msra.gmra.mrb[48].mxu1 %vm477_vm3, %v4073_v23 }
 0x8f7   : > { %v7916_v48 = vpop.eup %7915  ;;  %7576 = vmatprep.mubr.msk.f32.mxu1 %vm7996_vm2, %v7995_v38 }
 0x8f8   : > { %v4074_v13 = vmul.f32 %v7916_v48, %v8632_v39  ;;  %v4823_v15 = vpop.permute.xlu1 %4822  ;;  %v4534_v46 = vpop.permute.xlu0 %4533 }
 0x8f9   : > { %7575 = vmatpush3.msra.mxu1 %v4534_v46 }
 0x8fa   : > { %7572 = vmatmul.mubr.msk.f32.vlgmr.msra.gmra.mrb[64].mxu0 %vm477_vm3, %v4074_v13  ;;  %7584 = vmatprep.subr.mxu1 %v186_v11 }
 0x8fb   : > { %v7918_v1 = vpop.eup %7917  ;;  %7580 = vmatpush3.msra.mxu0 %v4610_v7  ;;  %7581 = vmatprep.mubr.msk.f32.mxu0 %vm7996_vm2, %v7995_v38 }
 0x8fc   : > { %v4075_v14 = vmul.f32 %v7918_v1, %v8636_v51  ;;  %v4901_v20 = vpop.permute.xlu1 %4900  ;;  %v4825_v62 = vpop.permute.xlu0 %4824  ;;  %7598 = vmatprep.subr.mxu0 %v7995_v38 }
 0x8fe   : > { %7577 = vmatmul.mubr.msk.f32.vlgmr.msra.gmra.mrb[50].mxu1 %vm477_vm3, %v4075_v14 }
 0x8ff   : > { %v7920_v39 = vpop.eup %7919  ;;  %7585 = vmatpush3.msra.mxu1 %v186_v11 }
 0x900   : > { %v4076_v0 = vmul.f32 %v7920_v39, %v8640_v3  ;;  %v4979_v4 = vpop.permute.xlu1 %4978  ;;  %7618 = vmatprep.subr.mxu1 %v7995_v38  ;;  %v4903_v5 = vpop.permute.xlu0 %4902 }
 0x902   : > { %7582 = vmatmul.mubr.msk.f32.vlgmr.msra.gmra.mrb[66].mxu0 %vm477_vm3, %v4076_v0 }
 0x903   : > { %7599 = vmatpush3.xpose.msk.msra.mxu0 %vm477_vm3, %v4825_v62  ;;  %7600 = vmatprep.mubr.msk.f32.mxu0 %vm7996_vm2, %v7995_v38 }
 0x904   : > { %v5057_v51 = vpop.permute.xlu1 %5056  ;;  %7603 = vmatprep.subr.mxu0 %v7995_v38  ;;  %v4981_v3 = vpop.permute.xlu0 %4980 }
 0x906   : > { %7601 = vmatmul.mubr.msk.f32.vlgmr.msra.gmra.mrb[68].mxu0 %vm477_vm3, %v4823_v15 }
 0x907   : > { %7604 = vmatpush3.xpose.msk.msra.mxu0 %vm477_vm3, %v4903_v5  ;;  %7605 = vmatprep.mubr.msk.f32.mxu0 %vm7996_vm2, %v7995_v38 }
 0x908   : > { %v5215_v8 = vpop.permute.xlu1 %5214  ;;  %7608 = vmatprep.subr.mxu0 %v7995_v38  ;;  %v5059_v50 = vpop.permute.xlu0 %5058 }
 0x90a   : > { %7606 = vmatmul.mubr.msk.f32.vlgmr.msra.gmra.mrb[70].mxu0 %vm477_vm3, %v4901_v20 }
 0x90b   : > { %7609 = vmatpush3.xpose.msk.msra.mxu0 %vm477_vm3, %v4981_v3  ;;  %7610 = vmatprep.mubr.msk.f32.mxu0 %vm7996_vm2, %v7995_v38 }
 0x90c   : > { %7613 = vmatprep.subr.mxu0 %v7995_v38  ;;  %v5213_v12 = vpop.permute.xlu1 %5212  ;;  %v5137_v61 = vpop.permute.xlu0 %5136 }
 0x90e   : > { %7611 = vmatmul.mubr.msk.f32.vlgmr.msra.gmra.mrb[72].mxu0 %vm477_vm3, %v4979_v4 }
 0x90f   : > { %7614 = vmatpush3.xpose.msk.msra.mxu0 %vm477_vm3, %v5059_v50  ;;  %7615 = vmatprep.mubr.msk.f32.mxu0 %vm7996_vm2, %v7995_v38 }
 0x910   : > { %7623 = vmatprep.subr.mxu0 %v7995_v38  ;;  %v5371_v54 = vpop.permute.xlu1 %5370  ;;  %v5135_v6 = vpop.permute.xlu0 %5134 }
 0x912   : > { %7616 = vmatmul.mubr.msk.f32.vlgmr.msra.gmra.mrb[74].mxu0 %vm477_vm3, %v5057_v51 }
 0x913   : > { %7624 = vmatpush3.xpose.msk.msra.mxu0 %vm477_vm3, %v5215_v8  ;;  %7625 = vmatprep.mubr.msk.f32.mxu0 %vm7996_vm2, %v7995_v38 }
 0x914   : > { %7633 = vmatprep.subr.mxu0 %v7995_v38  ;;  %v5369_v10 = vpop.permute.xlu1 %5368  ;;  %v5293_v60 = vpop.permute.xlu0 %5292 }
 0x916   : > { %7626 = vmatmul.mubr.msk.f32.vlgmr.msra.gmra.mrb[76].mxu0 %vm477_vm3, %v5213_v12 }
 0x917   : > { %7634 = vmatpush3.xpose.msk.msra.mxu0 %vm477_vm3, %v5371_v54  ;;  %7635 = vmatprep.mubr.msk.f32.mxu0 %vm7996_vm2, %v7995_v38 }
 0x918   : > { %7643 = vmatprep.subr.mxu0 %v7995_v38  ;;  %v5291_v34 = vpop.permute.xlu0 %5290 }
 0x91a   : > { %7636 = vmatmul.mubr.msk.f32.vlgmr.msra.gmra.mrb[78].mxu0 %vm477_vm3, %v5369_v10 }
 0x91b   : > { %7645 = vmatprep.mubr.msk.f32.mxu0 %vm7996_vm2, %v7995_v38 }
 0x9b9   : > { %v4149_v9 = vpop.f32.mrb[44].mxu1 }
 0x9ba   : > { %v7548_v16 = vpop.f32.mrb[45].mxu1  ;;  %7586 = vmatprep.mubr.msk.f32.mxu1 %vm477_vm3, %v4149_v9 }
 0x9bd   : > { %v4225_v17 = vpop.f32.mrb[60].mxu0 }
 0x9be   : > { %v7553_v26 = vpop.f32.mrb[61].mxu0  ;;  %7587 = vmatmul.mubr.msk.f32.vlgmr.msra.gmra.mrb[36].mxu1 %vm477_vm3, %v4225_v17 }
 0x9bf   : > { %7619 = vmatpush3.xpose.msk.msra.mxu1 %vm477_vm3, %v5137_v61 }
 0x9c0   : > { %7628 = vmatprep.subr.mxu1 %v7995_v38 }
 0x9c1   : > { %v4301_v32 = vpop.f32.mrb[46].mxu1 }
 0x9c2   : > { %v7558_v21 = vpop.f32.mrb[47].mxu1  ;;  %7589 = vmatprep.mubr.msk.f32.mxu1 %vm477_vm3, %v4301_v32 }
 0x9c5   : > { %v4377_v63 = vpop.f32.mrb[62].mxu0 }
 0x9c6   : > { %v7563_v28 = vpop.f32.mrb[63].mxu0  ;;  %7590 = vmatmul.mubr.msk.f32.gmra.mrb[38].mxu1 %vm477_vm3, %v4377_v63 }
 0x9c9   : > { %v4453_v36 = vpop.f32.mrb[48].mxu1 }
 0x9ca   : > { %v7568_v2 = vpop.f32.mrb[49].mxu1  ;;  %7592 = vmatprep.mubr.msk.f32.mxu1 %vm477_vm3, %v4453_v36 }
 0x9cd   : > { %v4529_v44 = vpop.f32.mrb[64].mxu0 }
 0x9ce   : > { %v7573_v40 = vpop.f32.mrb[65].mxu0  ;;  %7593 = vmatmul.mubr.msk.f32.gmra.mrb[40].mxu1 %vm477_vm3, %v4529_v44 }
 0x9d1   : > { %v4605_v22 = vpop.f32.mrb[50].mxu1 }
 0x9d2   : > { %v7578_v58 = vpop.f32.mrb[51].mxu1  ;;  %7595 = vmatprep.mubr.msk.f32.mxu1 %vm477_vm3, %v4605_v22 }
 0x9d5   : > { %v4681_v30 = vpop.f32.mrb[66].mxu0 }
 0x9d6   : > { %v7583_v42 = vpop.f32.mrb[67].mxu0  ;;  %7596 = vmatmul.mubr.msk.f32.gmra.mrb[42].mxu1 %vm477_vm3, %v4681_v30 }
 0x9d7   : > { %7620 = vmatprep.mubr.msk.f32.mxu1 %vm7996_vm2, %v7995_v38 }
 0x9d9   : > { %v8786_v19 = vpop.f32.mrb[68].mxu0 }
 0x9da   : > { %v7602_v59 = vpop.f32.mrb[69].mxu0  ;;  %7621 = vmatmul.mubr.msk.f32.vlgmr.msra.gmra.mrb[52].mxu1 %vm477_vm3, %v5135_v6  ;;  %v5446_v41 = vsel %vm477_vm3, %v8786_v19, -inf }
 0x9db   : > { %7629 = vmatpush3.xpose.msk.msra.mxu1 %vm477_vm3, %v5293_v60  ;;  %5447 = vmax.xlane.f32.xlu0 %v5446_v41 }
 0x9dc   : > { %7630 = vmatprep.mubr.msk.f32.mxu1 %vm7996_vm2, %v7995_v38  ;;  %7638 = vmatprep.subr.mxu1 %v7995_v38 }
 0x9dd   : > { %v4974_v23 = vpop.f32.mrb[70].mxu0 }
 0x9de   : > { %v7607_v7 = vpop.f32.mrb[71].mxu0  ;;  %7631 = vmatmul.mubr.msk.f32.vlgmr.msra.gmra.mrb[54].mxu1 %vm477_vm3, %v5291_v34  ;;  %v5449_v57 = vsel %vm477_vm3, %v4974_v23, -inf }
 0x9df   : > { %5450 = vmax.xlane.f32.xlu1 %v5449_v57  ;;  %7640 = vmatprep.mubr.msk.f32.mxu1 %vm7996_vm2, %v7995_v38 }
 0x9e1   : > { %v5052_v48 = vpop.f32.mrb[72].mxu0 }
 0x9e2   : > { %v7612_v11 = vpop.f32.mrb[73].mxu0  ;;  %v5452_v13 = vsel %vm477_vm3, %v5052_v48, -inf }
 0x9e3   : > { %5453 = vmax.xlane.f32.xlu0 %v5452_v13 }
 0x9e5   : > { %v5130_v15 = vpop.f32.mrb[74].mxu0 }
 0x9e6   : > { %v7617_v46 = vpop.f32.mrb[75].mxu0  ;;  %v5455_v1 = vsel %vm477_vm3, %v5130_v15, -inf }
 0x9e7   : > { %5456 = vmax.xlane.f32.xlu0 %v5455_v1 }
 0x9e9   : > { %v5286_v14 = vpop.f32.mrb[76].mxu0 }
 0x9ea   : > { %v7627_v20 = vpop.f32.mrb[77].mxu0  ;;  %v5461_v62 = vsel %vm477_vm3, %v5286_v14, -inf }
 0x9eb   : > { %5462 = vmax.xlane.f32.xlu0 %v5461_v62 }
 0x9ed   : > { %v5442_v39 = vpop.f32.mrb[78].mxu0 }
 0x9ee   : > { %v7637_v0 = vpop.f32.mrb[79].mxu0  ;;  %v5467_v4 = vsel %vm477_vm3, %v5442_v39, -inf }
 0x9ef   : > { %5468 = vmax.xlane.f32.xlu0 %v5467_v4 }
 0xa68   : > { %v5448_v5 = vpop.xlane.xlu0 %5447 }
 0xa69   : > { %v5470_v22 = vsub.f32 %v8786_v19, %v5448_v5 }
 0xa6b   : > { %v5478_v58 = vmul.f32 1.442695, %v5470_v22 }
 0xa6c   : > { %v5451_v51 = vpop.xlane.xlu1 %5450 }
 0xa6d   : > { %v5471_v3 = vsub.f32 %v4974_v23, %v5451_v51 }
 0xa6f   : > { %v5480_v8 = vmul.f32 1.442695, %v5471_v3 }
 0xa70   : > { %v5454_v12 = vpop.xlane.xlu0 %5453 }
 0xa71   : > { %7921 = vpow2.f32 %v5480_v8  ;;  %v5472_v30 = vsub.f32 %v5052_v48, %v5454_v12 }
 0xa73   : > { %v5482_v42 = vmul.f32 1.442695, %v5472_v30 }
 0xa74   : > { %v5457_v50 = vpop.xlane.xlu0 %5456 }
 0xa75   : > { %v5473_v54 = vsub.f32 %v5130_v15, %v5457_v50 }
 0xa77   : > { %v5484_v10 = vmul.f32 1.442695, %v5473_v54 }
 0xa78   : > { %v5463_v9 = vpop.xlane.xlu0 %5462 }
 0xa79   : > { %7923 = vpow2.f32 %v5484_v10  ;;  %v5475_v16 = vsub.f32 %v5286_v14, %v5463_v9 }
 0xa7b   : > { %v7922_v17 = vpop.eup %7921  ;;  %v5488_v61 = vmul.f32 1.442695, %v5475_v16 }
 0xa7c   : > { %v5469_v26 = vpop.xlane.xlu0 %5468  ;;  %v5497_v32 = vsel %vm477_vm3, %v7922_v17, 0.0 }
 0xa7d   : > { %7925 = vpow2.f32 %v5488_v61  ;;  %v5477_v21 = vsub.f32 %v5442_v39, %v5469_v26  ;;  %5498 = vadd.xlane.f32.xlu0 %v5497_v32 }
 0xa7f   : > { %v5492_v63 = vmul.f32 1.442695, %v5477_v21 }
 0xa81   : > { %7927 = vpow2.f32 %v5492_v63 }
 0xa82   : > { %7929 = vpow2.f32 %v5478_v58  ;;  %v187_v58 = vld [vmem:[%s9156_s1 + $0x28] sm:$0xff] }
 0xa83   : > { %v8804_v28 = vpop.eup %7923  ;;  %7931 = vpow2.f32 %v5482_v42 }
 0xa84   : > { %v5503_v36 = vsel %vm477_vm3, %v8804_v28, 0.0 }
 0xa85   : > { %5504 = vadd.xlane.f32.xlu0 %v5503_v36 }
 0xa87   : > { %v8808_v2 = vpop.eup %7925 }
 0xa88   : > { %v5509_v44 = vsel %vm477_vm3, %v8808_v2, 0.0 }
 0xa89   : > { %5510 = vadd.xlane.f32.xlu0 %v5509_v44 }
 0xa8b   : > { %v8812_v40 = vpop.eup %7927 }
 0xa8c   : > { %v5515_v6 = vsel %vm477_vm3, %v8812_v40, 0.0  ;;  %v7930_v23 = vpop.eup %7929 }
 0xa8d   : > { %5516 = vadd.xlane.f32.xlu0 %v5515_v6  ;;  %v5494_v7 = vsel %vm477_vm3, %v7930_v23, 0.0 }
 0xaa3   : > { %5610 = vrot.lane.b32.xlu0 %v8122_v47, %s8007_s26 }
 0xaa7   : > { %5838 = vrot.lane.b32.xlu0 %v8133_v55, %s8007_s26  ;;  %v7932_v55 = vpop.eup %7931 }
 0xaa8   : > { %v5500_v57 = vsel %vm477_vm3, %v7932_v55, 0.0 }
 0xaab   : > { %5990 = vrot.lane.b32.xlu0 %v8137_v56, %s8007_s26 }
 0xaad   : > { %v5208_v60 = vpop.f32.mrb[52].mxu1 }
 0xaae   : > { %v7622_v59 = vpop.f32.mrb[53].mxu1  ;;  %v5458_v41 = vsel %vm477_vm3, %v5208_v60, -inf }
 0xaaf   : > { %5459 = vmax.xlane.f32.xlu1 %v5458_v41 }
 0xab1   : > { %v5364_v19 = vpop.f32.mrb[54].mxu1 }
 0xab2   : > { %v7632_v34 = vpop.f32.mrb[55].mxu1  ;;  %v5464_v47 = vsel %vm477_vm3, %v5364_v19, -inf }
 0xab3   : > { %5465 = vmax.xlane.f32.xlu1 %v5464_v47 }
 0xab7   : > { %5495 = vadd.xlane.f32.xlu1 %v5494_v7 }
 0xabb   : > { %5501 = vadd.xlane.f32.xlu1 %v5500_v57 }
 0xacc   : > { %5534 = vrot.lane.b32.xlu1 %v8117_v43, %s8007_s26 }
 0xad0   : > { %5686 = vrot.lane.b32.xlu1 %v8129_v52, %s8007_s26 }
 0xad4   : > { %5762 = vrot.lane.b32.xlu1 %v8120_v45, %s8007_s26 }
 0xad8   : > { %5914 = vrot.lane.b32.xlu1 %v8126_v49, %s8007_s26 }
 0xb0a   : > { %v5499_v56 = vpop.xlane.xlu0 %5498 }
 0xb0b   : > { %7933 = vrcp.f32 %v5499_v56 }
 0xb12   : > { %v5505_v48 = vpop.xlane.xlu0 %5504 }
 0xb15   : > { %v7934_v15 = vpop.eup %7933 }
 0xb16   : > { %v5511_v11 = vpop.xlane.xlu0 %5510  ;;  %v5527_v46 = vmul.f32 %v7934_v15, %v7922_v17  ;;  %v6281_v15 = vsub.s32 1, %v8070_v18 }
 0xb1a   : > { %v5517_v13 = vpop.xlane.xlu0 %5516 }
 0xb1e   : > { %v5611_v1 = vpop.permute.xlu0 %5610 }
 0xb1f   : > { %7644 = vmatpush3.msra.mxu0 %v5611_v1 }
 0xb20   : > { %7646 = vmatmul.mubr.msk.f32.vlgmr.msra.gmra.mrb[80].mxu0 %vm477_vm3, %v5527_v46  ;;  %7653 = vmatprep.subr.mxu0 %v7995_v38  ;;  %v8883_v46 = vld [vmem:[%s9156_s1 + $0x70] sm:$0xff] }
 0xb21   : > { %7655 = vmatprep.mubr.msk.f32.mxu0 %vm7996_vm2, %v7995_v38  ;;  %v6282_v1 = vrot.slane %v8883_v46, %v6281_v15 }
 0xb22   : > { %v5839_v26 = vpop.permute.xlu0 %5838 }
 0xb26   : > { %v5991_v30 = vpop.permute.xlu0 %5990 }
 0xb3c   : > { %v5460_v43 = vpop.xlane.xlu1 %5459 }
 0xb3d   : > { %v5474_v45 = vsub.f32 %v5208_v60, %v5460_v43 }
 0xb3f   : > { %v5486_v52 = vmul.f32 1.442695, %v5474_v45 }
 0xb40   : > { %v5466_v49 = vpop.xlane.xlu1 %5465 }
 0xb41   : > { %7935 = vpow2.f32 %v5486_v52  ;;  %v5476_v14 = vsub.f32 %v5364_v19, %v5466_v49 }
 0xb43   : > { %v5490_v20 = vmul.f32 1.442695, %v5476_v14 }
 0xb44   : > { %v5496_v62 = vpop.xlane.xlu1 %5495 }
 0xb45   : > { %7937 = vpow2.f32 %v5490_v20 }
 0xb46   : > { %7939 = vrcp.f32 %v5496_v62 }
 0xb47   : > { %7941 = vrcp.f32 %v5505_v48 }
 0xb48   : > { %v5502_v39 = vpop.xlane.xlu1 %5501 }
 0xb49   : > { %7943 = vrcp.f32 %v5502_v39 }
 0xb4a   : > { %7945 = vrcp.f32 %v5511_v11 }
 0xb4b   : > { %v7936_v0 = vpop.eup %7935  ;;  %7947 = vrcp.f32 %v5517_v13 }
 0xb4c   : > { %v5535_v4 = vpop.permute.xlu1 %5534  ;;  %v5506_v5 = vsel %vm477_vm3, %v7936_v0, 0.0 }
 0xb4d   : > { %5507 = vadd.xlane.f32.xlu1 %v5506_v5  ;;  %7639 = vmatpush3.msra.mxu1 %v5535_v4 }
 0xb4e   : > { %7648 = vmatprep.subr.mxu1 %v7995_v38 }
 0xb4f   : > { %v7938_v51 = vpop.eup %7937 }
 0xb50   : > { %v7940_v3 = vpop.eup %7939  ;;  %v5687_v8 = vpop.permute.xlu1 %5686  ;;  %v5512_v12 = vsel %vm477_vm3, %v7938_v51, 0.0 }
 0xb51   : > { %v7942_v50 = vpop.eup %7941  ;;  %v5526_v54 = vmul.f32 %v7940_v3, %v7930_v23  ;;  %5513 = vadd.xlane.f32.xlu1 %v5512_v12 }
 0xb52   : > { %v5529_v9 = vmul.f32 %v7942_v50, %v8804_v28 }
 0xb53   : > { %v7944_v10 = vpop.eup %7943  ;;  %7641 = vmatmul.mubr.msk.f32.vlgmr.msra.gmra.mrb[56].mxu1 %vm477_vm3, %v5526_v54 }
 0xb54   : > { %v5528_v16 = vmul.f32 %v7944_v10, %v7932_v55  ;;  %7649 = vmatpush3.msra.mxu1 %v5687_v8  ;;  %v5763_v17 = vpop.permute.xlu1 %5762  ;;  %7650 = vmatprep.mubr.msk.f32.mxu1 %vm7996_vm2, %v7995_v38  ;;  %v7946_v61 = vpop.eup %7945 }
 0xb55   : > { %7654 = vmatpush3.msra.mxu0 %v5763_v17  ;;  %7658 = vmatprep.subr.mxu1 %v7995_v38  ;;  %v5531_v32 = vmul.f32 %v7946_v61, %v8808_v2  ;;  %v7948_v36 = vpop.eup %7947 }
 0xb56   : > { %7656 = vmatmul.mubr.msk.f32.vlgmr.msra.gmra.mrb[82].mxu0 %vm477_vm3, %v5529_v9  ;;  %7663 = vmatprep.subr.mxu0 %v7995_v38  ;;  %v5533_v2 = vmul.f32 %v7948_v36, %v8812_v40 }
 0xb57   : > { %7651 = vmatmul.mubr.msk.f32.vlgmr.msra.gmra.mrb[58].mxu1 %vm477_vm3, %v5528_v16  ;;  %7665 = vmatprep.mubr.msk.f32.mxu0 %vm7996_vm2, %v7995_v38 }
 0xb58   : > { %7659 = vmatpush3.msra.mxu1 %v5839_v26  ;;  %v5915_v21 = vpop.permute.xlu1 %5914  ;;  %7660 = vmatprep.mubr.msk.f32.mxu1 %vm7996_vm2, %v7995_v38 }
 0xb59   : > { %7664 = vmatpush3.msra.mxu0 %v5915_v21  ;;  %7668 = vmatprep.subr.mxu1 %v7995_v38 }
 0xb5a   : > { %7666 = vmatmul.mubr.msk.f32.vlgmr.msra.gmra.mrb[84].mxu0 %vm477_vm3, %v5531_v32  ;;  %7673 = vmatprep.subr.mxu0 %v7995_v38 }
 0xb5b   : > { %7675 = vmatprep.mubr.msk.f32.mxu0 %vm7996_vm2, %v7995_v38 }
 0xb62   : > { %6066 = vrot.lane.b32.xlu1 %v8131_v53, %s8007_s26 }
 0xbda   : > { %v5508_v63 = vpop.xlane.xlu1 %5507 }
 0xbdb   : > { %7949 = vrcp.f32 %v5508_v63 }
 0xbde   : > { %v5514_v28 = vpop.xlane.xlu1 %5513 }
 0xbdf   : > { %7951 = vrcp.f32 %v5514_v28 }
 0xbe2   : > { %v6067_v44 = vpop.permute.xlu1 %6066 }
 0xbe3   : > { %7674 = vmatpush3.msra.mxu0 %v6067_v44 }
 0xbe4   : > { %7676 = vmatmul.mubr.msk.f32.vlgmr.msra.gmra.mrb[86].mxu0 %vm477_vm3, %v5533_v2 }
 0xbe5   : > { %v7950_v6 = vpop.eup %7949 }
 0xbe6   : > { %v5530_v22 = vmul.f32 %v7950_v6, %v7936_v0 }
 0xbe8   : > { %7661 = vmatmul.mubr.msk.f32.vlgmr.msra.gmra.mrb[60].mxu1 %vm477_vm3, %v5530_v22 }
 0xbe9   : > { %v7952_v53 = vpop.eup %7951  ;;  %7669 = vmatpush3.msra.mxu1 %v5991_v30  ;;  %7670 = vmatprep.mubr.msk.f32.mxu1 %vm7996_vm2, %v7995_v38 }
 0xbea   : > { %v5532_v42 = vmul.f32 %v7952_v53, %v7938_v51  ;;  %7678 = vmatprep.subr.mxu1 %v187_v58 }
 0xbec   : > { %7671 = vmatmul.mubr.msk.f32.vlgmr.msra.gmra.mrb[62].mxu1 %vm477_vm3, %v5532_v42 }
 0xbed   : > { %7679 = vmatpush3.msra.mxu1 %v187_v58 }
 0xbf3   : > { %v5682_v40 = vpop.f32.mrb[80].mxu0 }
 0xbf4   : > { %v7647_v60 = vpop.f32.mrb[81].mxu0 }
 0xc26   : > { %v5606_v59 = vpop.f32.mrb[56].mxu1 }
 0xc27   : > { %v7642_v41 = vpop.f32.mrb[57].mxu1  ;;  %7680 = vmatprep.mubr.msk.f32.mxu1 %vm477_vm3, %v5606_v59 }
 0xc28   : > { %7681 = vmatmul.mubr.msk.f32.vlgmr.msra.gmra.mrb[36].mxu1 %vm477_vm3, %v5682_v40 }
 0xc29   : > { %v5834_v19 = vpop.f32.mrb[82].mxu0 }
 0xc2a   : > { %v5758_v34 = vpop.f32.mrb[58].mxu1  ;;  %v7657_v47 = vpop.f32.mrb[83].mxu0 }
 0xc2b   : > { %v7652_v23 = vpop.f32.mrb[59].mxu1  ;;  %7683 = vmatprep.mubr.msk.f32.mxu1 %vm477_vm3, %v5758_v34 }
 0xc2c   : > { %7684 = vmatmul.mubr.msk.f32.gmra.mrb[38].mxu1 %vm477_vm3, %v5834_v19 }
 0xc2d   : > { %v5986_v38 = vpop.f32.mrb[84].mxu0 }
 0xc2e   : > { %v7667_v7 = vpop.f32.mrb[85].mxu0 }
 0xc2f   : > { %v202_v7 = vld [vmem:[%s9157_s2 + $0x28] sm:$0xff] }
 0xcb7   : > { %v6138_v55 = vpop.f32.mrb[86].mxu0 }
 0xcb8   : > { %v7677_v57 = vpop.f32.mrb[87].mxu0 }
 0xcb9   : > { %v203_v57 = vld [vmem:[%s9157_s2 + $0x30] sm:$0xff] }
 0xcbb   : > { %v5910_v56 = vpop.f32.mrb[60].mxu1 }
 0xcbc   : > { %v7662_v48 = vpop.f32.mrb[61].mxu1  ;;  %7686 = vmatprep.mubr.msk.f32.mxu1 %vm477_vm3, %v5910_v56  ;;  %v204_v56 = vld [vmem:[%s9157_s2 + $0x38] sm:$0xff] }
 0xcbd   : > { %7687 = vmatmul.mubr.msk.f32.gmra.mrb[40].mxu1 %vm477_vm3, %v5986_v38  ;;  %v201_v38 = vld [vmem:[%s9157_s2 + $0x20] sm:$0xff]  ;;  %v7756_v48 = vpack.c.bf16 %v204_v56, %v203_v57  ;;  %v192_v57 = vld [vmem:[%s9156_s1 + $0x50] sm:$0xff]  ;;  %v193_v56 = vld [vmem:[%s9156_s1 + $0x58] sm:$0xff] }
 0xcbf   : > { %v6062_v11 = vpop.f32.mrb[62].mxu1 }
 0xcc0   : > { %v7672_v13 = vpop.f32.mrb[63].mxu1  ;;  %7689 = vmatprep.mubr.msk.f32.mxu1 %vm477_vm3, %v6062_v11 }
 0xcc1   : > { %7690 = vmatmul.mubr.msk.f32.gmra.mrb[42].mxu1 %vm477_vm3, %v6138_v55  ;;  %v7752_v55 = vpack.c.bf16 %v202_v7, %v201_v38  ;;  %v191_v7 = vld [vmem:[%s9156_s1 + $0x48] sm:$0xff] }
 0xcc3   : > { %7753 = vmatprep.subr.bf16.mxu0 %v7752_v55 }
 0xcc4   : > { %7755 = vmatpush3.bf16.msra.mxu0 %v7752_v55 }
 0xcc5   : > { %7757 = vmatprep.subr.bf16.mxu0 %v7756_v48 }
 0xcc8   : > { %7759 = vmatpush3.bf16.msra.mxu0 %v7756_v48  ;;  %v7768_v48 = vpack.c.bf16 %v193_v56, %v192_v57 }
 0xcfb   : > { %v7682_v43 = vpop.f32.mrb[36].mxu1 }
 0xcfc   : > { %v6284_v45 = vadd.f32 %v7682_v43, %v6282_v1  ;;  %v6232_v52 = vpop.f32.mrb[37].mxu1 }
 0xcfd   : > { %v6283_v49 = vadd.f32 %v6282_v1, %v6232_v52 }
 0xcfe   : > { %v6292_v14 = vadd.f32 %v6284_v45, %v8078_v25 }
 0xcff   : > { %v6291_v20 = vadd.f32 %v6283_v49, %v8076_v24  ;;  %v7685_v62 = vpop.f32.mrb[38].mxu1 }
 0xd00   : > { %v6242_v39 = vpop.f32.mrb[39].mxu1  ;;  %v6302_v0 = vsel %vm344_vm1, %v6292_v14, 0.0  ;;  %v6286_v4 = vadd.f32 %v7685_v62, %v6282_v1 }
 0xd01   : > { %v6285_v5 = vadd.f32 %v6282_v1, %v6242_v39  ;;  %6303 = vadd.xlane.f32.xlu1 %v6302_v0  ;;  %v6299_v51 = vsel %vm344_vm1, %v6291_v20, 0.0 }
 0xd02   : > { %6300 = vadd.xlane.f32.xlu0 %v6299_v51  ;;  %v6294_v8 = vadd.f32 %v6286_v4, %v8082_v27 }
 0xd03   : > { %v6293_v3 = vadd.f32 %v6285_v5, %v8086_v29 }
 0xd04   : > { %v6308_v25 = vsel %vm344_vm1, %v6294_v8, 0.0 }
 0xd05   : > { %v6305_v12 = vsel %vm344_vm1, %v6293_v3, 0.0 }
 0xd06   : > { %6306 = vadd.xlane.f32.xlu0 %v6305_v12 }
 0xd0a   : > { %6309 = vadd.xlane.f32.xlu0 %v6308_v25 }
 0xd8e   : > { %v6304_v24 = vpop.xlane.xlu1 %6303 }
 0xd8f   : > { %v6301_v50 = vpop.xlane.xlu0 %6300  ;;  %v6325_v10 = vmul.f32 0.03125, %v6304_v24 }
 0xd90   : > { %v7688_v54 = vpop.f32.mrb[40].mxu1  ;;  %v6324_v17 = vmul.f32 0.03125, %v6301_v50 }
 0xd91   : > { %v6288_v9 = vadd.f32 %v7688_v54, %v6282_v1  ;;  %v6252_v16 = vpop.f32.mrb[41].mxu1  ;;  %v8898_v21 = vsub.f32 %v6292_v14, %v6325_v10 }
 0xd92   : > { %v6287_v61 = vadd.f32 %v6282_v1, %v6252_v16  ;;  %v8901_v2 = vsub.f32 %v6291_v20, %v6324_v17 }
 0xd93   : > { %v6296_v26 = vadd.f32 %v6288_v9, %v8090_v31  ;;  %v6307_v32 = vpop.xlane.xlu0 %6306  ;;  %v6341_v42 = vmul.f32 %v8898_v21, %v8898_v21 }
 0xd94   : > { %v6295_v29 = vadd.f32 %v6287_v61, %v8094_v33  ;;  %v7691_v27 = vpop.f32.mrb[42].mxu1  ;;  %v6326_v44 = vmul.f32 0.03125, %v6307_v32 }
 0xd95   : > { %v6290_v63 = vadd.f32 %v7691_v27, %v6282_v1  ;;  %v6262_v28 = vpop.f32.mrb[43].mxu1  ;;  %v6314_v36 = vsel %vm344_vm1, %v6296_v26, 0.0  ;;  %v6351_v41 = vsel %vm344_vm1, %v6341_v42, 0.0 }
 0xd96   : > { %v6289_v6 = vadd.f32 %v6282_v1, %v6262_v28  ;;  %6315 = vadd.xlane.f32.xlu0 %v6314_v36  ;;  %v6311_v22 = vsel %vm344_vm1, %v6295_v29, 0.0  ;;  %v8909_v40 = vsub.f32 %v6293_v3, %v6326_v44  ;;  %v6406_v28 = vsub.s32 3, %v8070_v18 }
 0xd97   : > { %v6298_v58 = vadd.f32 %v6290_v63, %v8098_v35  ;;  %v6310_v31 = vpop.xlane.xlu0 %6309  ;;  %6312 = vadd.xlane.f32.xlu1 %v6311_v22  ;;  %v6340_v35 = vmul.f32 %v8901_v2, %v8901_v2  ;;  %v6418_v36 = vsub.s32 4, %v8070_v18 }
 0xd98   : > { %v6297_v33 = vadd.f32 %v6289_v6, %v8102_v37  ;;  %v6327_v30 = vmul.f32 0.03125, %v6310_v31  ;;  %v6342_v34 = vmul.f32 %v8909_v40, %v8909_v40  ;;  %v8959_v44 = vrot.slane %v8883_v46, %v6406_v28 }
 0xd99   : > { %v6320_v53 = vsel %vm344_vm1, %v6298_v58, 0.0  ;;  %v6348_v19 = vsel %vm344_vm1, %v6340_v35, 0.0  ;;  %v8963_v31 = vrot.slane %v8883_v46, %v6418_v36 }
 0xd9a   : > { %v8911_v60 = vsub.f32 %v6294_v8, %v6327_v30  ;;  %6321 = vadd.xlane.f32.xlu0 %v6320_v53  ;;  %v6317_v59 = vsel %vm344_vm1, %v6297_v33, 0.0  ;;  %v6354_v23 = vsel %vm344_vm1, %v6342_v34, 0.0 }
 0xd9b   : > { %6318 = vadd.xlane.f32.xlu1 %v6317_v59 }
 0xd9c   : > { %v6343_v37 = vmul.f32 %v8911_v60, %v8911_v60 }
 0xd9e   : > { %6352 = vadd.xlane.f32.xlu0 %v6351_v41  ;;  %v6357_v47 = vsel %vm344_vm1, %v6343_v37, 0.0 }
 0xd9f   : > { %6349 = vadd.xlane.f32.xlu1 %v6348_v19 }
 0xda2   : > { %6358 = vadd.xlane.f32.xlu0 %v6357_v47  ;;  %v189_v47 = vld [vmem:[%s9156_s1 + $0x38] sm:$0xff] }
 0xda3   : > { %6355 = vadd.xlane.f32.xlu1 %v6354_v23  ;;  %v190_v23 = vld [vmem:[%s9156_s1 + $0x40] sm:$0xff] }
 0xda4   : > { %v7764_v55 = vpack.c.bf16 %v191_v7, %v190_v23 }
 0xe23   : > { %v6316_v11 = vpop.xlane.xlu0 %6315 }
 0xe24   : > { %v6329_v13 = vmul.f32 0.03125, %v6316_v11  ;;  %v6313_v1 = vpop.xlane.xlu1 %6312  ;;  %v194_v11 = vld [vmem:[%s9156_s1 + $0x60] sm:$0xff] }
 0xe25   : > { %v6328_v43 = vmul.f32 0.03125, %v6313_v1 }
 0xe26   : > { %v8936_v45 = vsub.f32 %v6296_v26, %v6329_v13  ;;  %v195_v13 = vld [vmem:[%s9156_s1 + $0x68] sm:$0xff] }
 0xe27   : > { %v8938_v52 = vsub.f32 %v6295_v29, %v6328_v43  ;;  %v6322_v49 = vpop.xlane.xlu0 %6321  ;;  %v7772_v1 = vpack.c.bf16 %v195_v13, %v194_v11  ;;  %v6571_v13 = vsub.s32 2, %v8070_v18 }
 0xe28   : > { %v6331_v14 = vmul.f32 0.03125, %v6322_v49  ;;  %v6319_v20 = vpop.xlane.xlu1 %6318  ;;  %v6345_v62 = vmul.f32 %v8936_v45, %v8936_v45 }
 0xe29   : > { %v6330_v39 = vmul.f32 0.03125, %v6319_v20  ;;  %v6344_v0 = vmul.f32 %v8938_v52, %v8938_v52 }
 0xe2a   : > { %v8944_v4 = vsub.f32 %v6298_v58, %v6331_v14  ;;  %v6363_v5 = vsel %vm344_vm1, %v6345_v62, 0.0 }
 0xe2b   : > { %v8947_v51 = vsub.f32 %v6297_v33, %v6330_v39  ;;  %6364 = vadd.xlane.f32.xlu0 %v6363_v5  ;;  %v6353_v3 = vpop.xlane.xlu0 %6352  ;;  %v6360_v8 = vsel %vm344_vm1, %v6344_v0, 0.0 }
 0xe2c   : > { %v6373_v12 = vmul.f32 0.03125, %v6353_v3  ;;  %6361 = vadd.xlane.f32.xlu1 %v6360_v8  ;;  %v6350_v25 = vpop.xlane.xlu1 %6349  ;;  %v6347_v24 = vmul.f32 %v8944_v4, %v8944_v4 }
 0xe2d   : > { %v6372_v50 = vmul.f32 0.03125, %v6350_v25  ;;  %v6346_v54 = vmul.f32 %v8947_v51, %v8947_v51 }
 0xe2e   : > { %v6381_v10 = vadd.f32 1e-05, %v6373_v12  ;;  %v6369_v9 = vsel %vm344_vm1, %v6347_v24, 0.0 }
 0xe2f   : > { %v6380_v16 = vadd.f32 1e-05, %v6372_v50  ;;  %6370 = vadd.xlane.f32.xlu0 %v6369_v9  ;;  %v6359_v17 = vpop.xlane.xlu0 %6358  ;;  %v6366_v61 = vsel %vm344_vm1, %v6346_v54, 0.0 }
 0xe30   : > { %7953 = vrsqrt.f32 %v6381_v10  ;;  %v6375_v26 = vmul.f32 0.03125, %v6359_v17  ;;  %6367 = vadd.xlane.f32.xlu1 %v6366_v61  ;;  %v6356_v32 = vpop.xlane.xlu1 %6355 }
 0xe31   : > { %7955 = vrsqrt.f32 %v6380_v16  ;;  %v6374_v29 = vmul.f32 0.03125, %v6356_v32 }
 0xe32   : > { %v6383_v27 = vadd.f32 1e-05, %v6375_v26 }
 0xe33   : > { %v6382_v63 = vadd.f32 1e-05, %v6374_v29 }
 0xe34   : > { %7957 = vrsqrt.f32 %v6383_v27 }
 0xe35   : > { %7959 = vrsqrt.f32 %v6382_v63 }
 0xe3a   : > { %v7954_v6 = vpop.eup %7953 }
 0xe3b   : > { %v7956_v22 = vpop.eup %7955  ;;  %v6397_v58 = vmul.f32 %v7954_v6, %v8898_v21 }
 0xe3c   : > { %v6396_v33 = vmul.f32 %v7956_v22, %v8901_v2 }
 0xe3d   : > { %v6409_v30 = vmul.f32 %v8959_v44, %v6397_v58 }
 0xe3e   : > { %v7958_v53 = vpop.eup %7957  ;;  %v6408_v42 = vmul.f32 %v8959_v44, %v6396_v33 }
 0xe3f   : > { %v7960_v59 = vpop.eup %7959  ;;  %v6399_v35 = vmul.f32 %v7958_v53, %v8911_v60  ;;  %v8974_v21 = vadd.f32 %v8963_v31, %v6409_v30 }
 0xe40   : > { %v8970_v41 = vadd.f32 %v8963_v31, %v6408_v42  ;;  %v6398_v37 = vmul.f32 %v7960_v59, %v8909_v40  ;;  %v188_v40 = vld [vmem:[%s9156_s1 + $0x30] sm:$0xff] }
 0xe41   : > { %v6411_v19 = vmul.f32 %v8959_v44, %v6399_v35  ;;  %v7760_v38 = vpack.c.bf16 %v189_v47, %v188_v40 }
 0xe42   : > { %7700 = vmatprep.mubr.msk.f32.mxu0 %vm344_vm1, %v8970_v41  ;;  %v6410_v2 = vmul.f32 %v8959_v44, %v6398_v37 }
 0xe43   : > { %7701 = vmatmul.mubr.msk.f32.vlgmr.msra.gmra.mrb[88].mxu0 %vm344_vm1, %v8974_v21  ;;  %v8986_v34 = vadd.f32 %v8963_v31, %v6411_v19  ;;  %7761 = vmatprep.subr.bf16.mxu1 %v7760_v38 }
 0xe44   : > { %v8983_v60 = vadd.f32 %v8963_v31, %v6410_v2  ;;  %7763 = vmatpush3.bf16.msra.mxu1 %v7760_v38 }
 0xe45   : > { %7765 = vmatprep.subr.bf16.mxu1 %v7764_v55 }
 0xe46   : > { %7703 = vmatprep.mubr.msk.f32.mxu0 %vm344_vm1, %v8983_v60 }
 0xe47   : > { %7704 = vmatmul.mubr.msk.f32.gmra.mrb[90].mxu0 %vm344_vm1, %v8986_v34 }
 0xe48   : > { %7767 = vmatpush3.bf16.msra.mxu1 %v7764_v55 }
 0xe49   : > { %7769 = vmatprep.subr.bf16.mxu1 %v7768_v48 }
 0xe4c   : > { %7771 = vmatpush3.bf16.msra.mxu1 %v7768_v48 }
 0xe4d   : > { %7773 = vmatprep.subr.bf16.mxu1 %v7772_v1 }
 0xe50   : > { %7775 = vmatpush3.bf16.msra.mxu1 %v7772_v1  ;;  %v6572_v1 = vrot.slane %v8883_v46, %v6571_v13 }
 0xeb8   : > { %v6365_v43 = vpop.xlane.xlu0 %6364 }
 0xeb9   : > { %v6377_v49 = vmul.f32 0.03125, %v6365_v43  ;;  %v6362_v14 = vpop.xlane.xlu1 %6361 }
 0xeba   : > { %v6376_v20 = vmul.f32 0.03125, %v6362_v14 }
 0xebb   : > { %v6385_v62 = vadd.f32 1e-05, %v6377_v49 }
 0xebc   : > { %v6384_v39 = vadd.f32 1e-05, %v6376_v20  ;;  %v6371_v0 = vpop.xlane.xlu0 %6370 }
 0xebd   : > { %7961 = vrsqrt.f32 %v6385_v62  ;;  %v6379_v5 = vmul.f32 0.03125, %v6371_v0  ;;  %v6368_v3 = vpop.xlane.xlu1 %6367 }
 0xebe   : > { %7963 = vrsqrt.f32 %v6384_v39  ;;  %v6378_v8 = vmul.f32 0.03125, %v6368_v3 }
 0xebf   : > { %v6387_v12 = vadd.f32 1e-05, %v6379_v5 }
 0xec0   : > { %v6386_v25 = vadd.f32 1e-05, %v6378_v8 }
 0xec1   : > { %7965 = vrsqrt.f32 %v6387_v12 }
 0xec2   : > { %7967 = vrsqrt.f32 %v6386_v25 }
 0xec7   : > { %v7962_v24 = vpop.eup %7961 }
 0xec8   : > { %v7964_v50 = vpop.eup %7963  ;;  %v6401_v54 = vmul.f32 %v7962_v24, %v8936_v45 }
 0xec9   : > { %v6400_v10 = vmul.f32 %v7964_v50, %v8938_v52 }
 0xeca   : > { %v6413_v9 = vmul.f32 %v8959_v44, %v6401_v54 }
 0xecb   : > { %v7966_v16 = vpop.eup %7965  ;;  %v6412_v17 = vmul.f32 %v8959_v44, %v6400_v10 }
 0xecc   : > { %v7968_v61 = vpop.eup %7967  ;;  %v6403_v26 = vmul.f32 %v7966_v16, %v8944_v4  ;;  %v9026_v27 = vadd.f32 %v8963_v31, %v6413_v9 }
 0xecd   : > { %v9022_v32 = vadd.f32 %v8963_v31, %v6412_v17  ;;  %v6402_v29 = vmul.f32 %v7968_v61, %v8947_v51  ;;  %v7986_v51 = vld [vmem:[%s9157_s2 + $0x40] sm:$0xff] }
 0xece   : > { %v6415_v45 = vmul.f32 %v8959_v44, %v6403_v26  ;;  %v6431_v28 = vrot.slane %v7986_v51, %v6281_v15 }
 0xecf   : > { %7706 = vmatprep.mubr.msk.f32.mxu0 %vm344_vm1, %v9022_v32  ;;  %v6414_v52 = vmul.f32 %v8959_v44, %v6402_v29 }
 0xed0   : > { %7707 = vmatmul.mubr.msk.f32.gmra.mrb[92].mxu0 %vm344_vm1, %v9026_v27  ;;  %v9038_v63 = vadd.f32 %v8963_v31, %v6415_v45 }
 0xed1   : > { %v9035_v4 = vadd.f32 %v8963_v31, %v6414_v52 }
 0xed3   : > { %7709 = vmatprep.mubr.msk.f32.mxu0 %vm344_vm1, %v9035_v4 }
 0xed4   : > { %7710 = vmatmul.mubr.msk.f32.gmra.mrb[94].mxu0 %vm344_vm1, %v9038_v63 }
 0xf16   : > { %v7702_v36 = vpop.f32.mrb[88].mxu0 }
 0xf17   : > { %v6528_v6 = vadd.f32 %v7702_v36, %v6431_v28  ;;  %v6522_v22 = vpop.f32.mrb[89].mxu0 }
 0xf18   : > { %v6523_v58 = vadd.f32 %v6522_v22, %v6431_v28 }
 0xf19   : > { %v6562_v53 = vmax.f32 %v6528_v6, 0.0 }
 0xf1a   : > { %v6561_v33 = vmax.f32 %v6523_v58, 0.0  ;;  %v7705_v30 = vpop.f32.mrb[90].mxu0 }
 0xf1b   : > { %v6538_v42 = vadd.f32 %v7705_v30, %v6431_v28  ;;  %v6532_v59 = vpop.f32.mrb[91].mxu0 }
 0xf1c   : > { %v6533_v35 = vadd.f32 %v6532_v59, %v6431_v28  ;;  %7728 = vmatprep.mubr.msk.f32.mxu1 %vm6573_vm4, %v6561_v33 }
 0xf1d   : > { %7729 = vmatmul.mubr.msk.f32.vlgmr.msra.gmra.mrb[64].mxu1 %vm6573_vm4, %v6562_v53  ;;  %v6564_v19 = vmax.f32 %v6538_v42, 0.0 }
 0xf1e   : > { %v6563_v37 = vmax.f32 %v6533_v35, 0.0 }
 0xf20   : > { %7731 = vmatprep.mubr.msk.f32.mxu1 %vm6573_vm4, %v6563_v37 }
 0xf21   : > { %7732 = vmatmul.mubr.msk.f32.gmra.mrb[66].mxu1 %vm6573_vm4, %v6564_v19 }
 0xfa3   : > { %v7708_v15 = vpop.f32.mrb[92].mxu0 }
 0xfa4   : > { %v6548_v2 = vadd.f32 %v7708_v15, %v6431_v28  ;;  %v6542_v40 = vpop.f32.mrb[93].mxu0 }
 0xfa5   : > { %v6543_v47 = vadd.f32 %v6542_v40, %v6431_v28 }
 0xfa6   : > { %v6566_v7 = vmax.f32 %v6548_v2, 0.0 }
 0xfa7   : > { %v6565_v23 = vmax.f32 %v6543_v47, 0.0  ;;  %v7711_v38 = vpop.f32.mrb[94].mxu0 }
 0xfa8   : > { %v6558_v55 = vadd.f32 %v7711_v38, %v6431_v28  ;;  %v6552_v57 = vpop.f32.mrb[95].mxu0 }
 0xfa9   : > { %v6553_v56 = vadd.f32 %v6552_v57, %v6431_v28  ;;  %7734 = vmatprep.mubr.msk.f32.mxu1 %vm6573_vm4, %v6565_v23 }
 0xfaa   : > { %7735 = vmatmul.mubr.msk.f32.gmra.mrb[68].mxu1 %vm6573_vm4, %v6566_v7  ;;  %v6568_v11 = vmax.f32 %v6558_v55, 0.0 }
 0xfab   : > { %v6567_v48 = vmax.f32 %v6553_v56, 0.0 }
 0xfad   : > { %7737 = vmatprep.mubr.msk.f32.mxu1 %vm6573_vm4, %v6567_v48 }
 0xfae   : > { %7738 = vmatmul.mubr.msk.f32.gmra.mrb[70].mxu1 %vm6573_vm4, %v6568_v11 }
 0xff0   : > { %v7730_v43 = vpop.f32.mrb[64].mxu1 }
 0xff1   : > { %v6670_v49 = vadd.f32 %v7730_v43, %v6572_v1  ;;  %v6664_v14 = vpop.f32.mrb[65].mxu1 }
 0xff2   : > { %v6665_v20 = vadd.f32 %v6664_v14, %v6572_v1 }
 0xff3   : > { %v6704_v62 = vadd.f32 %v6670_v49, %v8974_v21 }
 0xff4   : > { %v6703_v39 = vadd.f32 %v6665_v20, %v8970_v41  ;;  %v7733_v0 = vpop.f32.mrb[66].mxu1 }
 0xff5   : > { %v6680_v5 = vadd.f32 %v7733_v0, %v6572_v1  ;;  %v6674_v3 = vpop.f32.mrb[67].mxu1  ;;  %v6714_v8 = vsel %vm344_vm1, %v6704_v62, 0.0 }
 0xff6   : > { %v6675_v12 = vadd.f32 %v6674_v3, %v6572_v1  ;;  %6715 = vadd.xlane.f32.xlu0 %v6714_v8  ;;  %v6711_v25 = vsel %vm344_vm1, %v6703_v39, 0.0 }
 0xff7   : > { %v6706_v18 = vadd.f32 %v6680_v5, %v8986_v34  ;;  %6712 = vadd.xlane.f32.xlu1 %v6711_v25 }
 0xff8   : > { %v6705_v46 = vadd.f32 %v6675_v12, %v8983_v60 }
 0xff9   : > { %v6720_v24 = vsel %vm344_vm1, %v6706_v18, 0.0 }
 0xffa   : > { %6721 = vadd.xlane.f32.xlu0 %v6720_v24  ;;  %v6717_v21 = vsel %vm344_vm1, %v6705_v46, 0.0 }
 0xffb   : > { %6718 = vadd.xlane.f32.xlu1 %v6717_v21 }
0x107d   : > { %v7736_v41 = vpop.f32.mrb[68].mxu1 }
0x107e   : > { %v6690_v50 = vadd.f32 %v7736_v41, %v6572_v1  ;;  %v6684_v54 = vpop.f32.mrb[69].mxu1 }
0x107f   : > { %v6685_v10 = vadd.f32 %v6684_v54, %v6572_v1 }
0x1080   : > { %v6708_v9 = vadd.f32 %v6690_v50, %v9026_v27 }
0x1081   : > { %v6707_v16 = vadd.f32 %v6685_v10, %v9022_v32  ;;  %v7739_v17 = vpop.f32.mrb[70].mxu1 }
0x1082   : > { %v6700_v61 = vadd.f32 %v7739_v17, %v6572_v1  ;;  %v6694_v34 = vpop.f32.mrb[71].mxu1  ;;  %v6726_v26 = vsel %vm344_vm1, %v6708_v9, 0.0 }
0x1083   : > { %v6695_v60 = vadd.f32 %v6694_v34, %v6572_v1  ;;  %v6716_v29 = vpop.xlane.xlu0 %6715  ;;  %6727 = vadd.xlane.f32.xlu0 %v6726_v26  ;;  %v6723_v45 = vsel %vm344_vm1, %v6707_v16, 0.0 }
0x1084   : > { %v6710_v52 = vadd.f32 %v6700_v61, %v9038_v63  ;;  %v6736_v51 = vmul.f32 0.03125, %v6716_v29  ;;  %6724 = vadd.xlane.f32.xlu1 %v6723_v45  ;;  %v6713_v28 = vpop.xlane.xlu1 %6712 }
0x1085   : > { %v6709_v36 = vadd.f32 %v6695_v60, %v9035_v4  ;;  %v6735_v27 = vmul.f32 0.03125, %v6713_v28 }
0x1086   : > { %v9073_v6 = vsub.f32 %v6704_v62, %v6736_v51  ;;  %v6732_v32 = vsel %vm344_vm1, %v6710_v52, 0.0 }
0x1087   : > { %v9076_v22 = vsub.f32 %v6703_v39, %v6735_v27  ;;  %v6722_v58 = vpop.xlane.xlu0 %6721  ;;  %6733 = vadd.xlane.f32.xlu0 %v6732_v32  ;;  %v6729_v33 = vsel %vm344_vm1, %v6709_v36, 0.0 }
0x1088   : > { %v6738_v30 = vmul.f32 0.03125, %v6722_v58  ;;  %6730 = vadd.xlane.f32.xlu1 %v6729_v33  ;;  %v6719_v53 = vpop.xlane.xlu1 %6718  ;;  %v6752_v63 = vmul.f32 %v9073_v6, %v9073_v6 }
0x1089   : > { %v6737_v42 = vmul.f32 0.03125, %v6719_v53  ;;  %v6751_v4 = vmul.f32 %v9076_v22, %v9076_v22 }
0x108a   : > { %v6746_v59 = vsub.f32 %v6706_v18, %v6738_v30  ;;  %v6762_v35 = vsel %vm344_vm1, %v6752_v63, 0.0 }
0x108b   : > { %v6745_v37 = vsub.f32 %v6705_v46, %v6737_v42  ;;  %6763 = vadd.xlane.f32.xlu0 %v6762_v35  ;;  %v6759_v19 = vsel %vm344_vm1, %v6751_v4, 0.0 }
0x108c   : > { %6760 = vadd.xlane.f32.xlu1 %v6759_v19  ;;  %v6754_v15 = vmul.f32 %v6746_v59, %v6746_v59 }
0x108d   : > { %v6753_v2 = vmul.f32 %v6745_v37, %v6745_v37 }
0x108e   : > { %v6768_v40 = vsel %vm344_vm1, %v6754_v15, 0.0 }
0x108f   : > { %6769 = vadd.xlane.f32.xlu0 %v6768_v40  ;;  %v6765_v47 = vsel %vm344_vm1, %v6753_v2, 0.0 }
0x1090   : > { %6766 = vadd.xlane.f32.xlu1 %v6765_v47 }
0x1110   : > { %v6728_v23 = vpop.xlane.xlu0 %6727 }
0x1111   : > { %v6740_v38 = vmul.f32 0.03125, %v6728_v23  ;;  %v6725_v7 = vpop.xlane.xlu1 %6724 }
0x1112   : > { %v6739_v55 = vmul.f32 0.03125, %v6725_v7 }
0x1113   : > { %v9087_v57 = vsub.f32 %v6708_v9, %v6740_v38 }
0x1114   : > { %v9089_v56 = vsub.f32 %v6707_v16, %v6739_v55  ;;  %v6734_v48 = vpop.xlane.xlu0 %6733 }
0x1115   : > { %v6742_v11 = vmul.f32 0.03125, %v6734_v48  ;;  %v6731_v13 = vpop.xlane.xlu1 %6730  ;;  %v6756_v1 = vmul.f32 %v9087_v57, %v9087_v57 }
0x1116   : > { %v6741_v43 = vmul.f32 0.03125, %v6731_v13  ;;  %v6755_v49 = vmul.f32 %v9089_v56, %v9089_v56 }
0x1117   : > { %v9095_v14 = vsub.f32 %v6710_v52, %v6742_v11  ;;  %v6774_v20 = vsel %vm344_vm1, %v6756_v1, 0.0 }
0x1118   : > { %v9098_v62 = vsub.f32 %v6709_v36, %v6741_v43  ;;  %6775 = vadd.xlane.f32.xlu0 %v6774_v20  ;;  %v6764_v39 = vpop.xlane.xlu0 %6763  ;;  %v6771_v0 = vsel %vm344_vm1, %v6755_v49, 0.0 }
0x1119   : > { %v6784_v5 = vmul.f32 0.03125, %v6764_v39  ;;  %6772 = vadd.xlane.f32.xlu1 %v6771_v0  ;;  %v6761_v3 = vpop.xlane.xlu1 %6760  ;;  %v6758_v8 = vmul.f32 %v9095_v14, %v9095_v14 }
0x111a   : > { %v6783_v12 = vmul.f32 0.03125, %v6761_v3  ;;  %v6757_v25 = vmul.f32 %v9098_v62, %v9098_v62 }
0x111b   : > { %v6792_v18 = vadd.f32 1e-05, %v6784_v5  ;;  %v6780_v46 = vsel %vm344_vm1, %v6758_v8, 0.0 }
0x111c   : > { %v6791_v24 = vadd.f32 1e-05, %v6783_v12  ;;  %6781 = vadd.xlane.f32.xlu0 %v6780_v46  ;;  %v6770_v21 = vpop.xlane.xlu0 %6769  ;;  %v6777_v41 = vsel %vm344_vm1, %v6757_v25, 0.0 }
0x111d   : > { %7969 = vrsqrt.f32 %v6792_v18  ;;  %v6786_v50 = vmul.f32 0.03125, %v6770_v21  ;;  %6778 = vadd.xlane.f32.xlu1 %v6777_v41  ;;  %v6767_v54 = vpop.xlane.xlu1 %6766 }
0x111e   : > { %7971 = vrsqrt.f32 %v6791_v24  ;;  %v6785_v10 = vmul.f32 0.03125, %v6767_v54 }
0x111f   : > { %v6794_v9 = vadd.f32 1e-05, %v6786_v50 }
0x1120   : > { %v6793_v16 = vadd.f32 1e-05, %v6785_v10 }
0x1121   : > { %7973 = vrsqrt.f32 %v6794_v9 }
0x1122   : > { %7975 = vrsqrt.f32 %v6793_v16 }
0x1127   : > { %v7970_v17 = vpop.eup %7969 }
0x1128   : > { %v7972_v61 = vpop.eup %7971  ;;  %v6808_v34 = vmul.f32 %v7970_v17, %v9073_v6 }
0x1129   : > { %v6807_v26 = vmul.f32 %v7972_v61, %v9076_v22 }
0x112a   : > { %v6816_v60 = vmul.f32 %v6808_v34, %v8959_v44 }
0x112b   : > { %v7974_v29 = vpop.eup %7973  ;;  %v6815_v45 = vmul.f32 %v6807_v26, %v8959_v44 }
0x112c   : > { %v7976_v52 = vpop.eup %7975  ;;  %v6824_v51 = vadd.f32 %v6816_v60, %v8963_v31  ;;  %v6810_v28 = vmul.f32 %v7974_v29, %v6746_v59 }
0x112d   : > { %v6823_v36 = vadd.f32 %v6815_v45, %v8963_v31  ;;  %v6809_v27 = vmul.f32 %v7976_v52, %v6745_v37 }
0x112e   : > { %6832 = vst.msk [vmem:[%s9115_s9 + $0x8] sm:$0xff] %vm344_vm1, %v6824_v51  ;;  %v6818_v6 = vmul.f32 %v6810_v28, %v8959_v44 }
0x112f   : > { %6831 = vst.msk [vmem:[%s9115_s9] sm:$0xff] %vm344_vm1, %v6823_v36  ;;  %v6817_v32 = vmul.f32 %v6809_v27, %v8959_v44 }
0x1130   : > { %v6826_v22 = vadd.f32 %v6818_v6, %v8963_v31 }
0x1131   : > { %v6825_v58 = vadd.f32 %v6817_v32, %v8963_v31 }
0x1132   : > { %6834 = vst.msk [vmem:[%s9115_s9 + $0x18] sm:$0xff] %vm344_vm1, %v6826_v22 }
0x1133   : > { %6833 = vst.msk [vmem:[%s9115_s9 + $0x10] sm:$0xff] %vm344_vm1, %v6825_v58 }
0x11a5   : > { %v6776_v33 = vpop.xlane.xlu0 %6775 }
0x11a6   : > { %v6788_v30 = vmul.f32 0.03125, %v6776_v33  ;;  %v6773_v53 = vpop.xlane.xlu1 %6772 }
0x11a7   : > { %v6787_v63 = vmul.f32 0.03125, %v6773_v53 }
0x11a8   : > { %v6796_v42 = vadd.f32 1e-05, %v6788_v30 }
0x11a9   : > { %v6795_v4 = vadd.f32 1e-05, %v6787_v63  ;;  %v6782_v59 = vpop.xlane.xlu0 %6781 }
0x11aa   : > { %7977 = vrsqrt.f32 %v6796_v42  ;;  %v6790_v35 = vmul.f32 0.03125, %v6782_v59  ;;  %v6779_v37 = vpop.xlane.xlu1 %6778 }
0x11ab   : > { %7979 = vrsqrt.f32 %v6795_v4  ;;  %v6789_v19 = vmul.f32 0.03125, %v6779_v37 }
0x11ac   : > { %v6798_v15 = vadd.f32 1e-05, %v6790_v35 }
0x11ad   : > { %v6797_v2 = vadd.f32 1e-05, %v6789_v19 }
0x11ae   : > { %7981 = vrsqrt.f32 %v6798_v15 }
0x11af   : > { %7983 = vrsqrt.f32 %v6797_v2 }
0x11b4   : > { %v7978_v40 = vpop.eup %7977 }
0x11b5   : > { %v7980_v47 = vpop.eup %7979  ;;  %v6812_v23 = vmul.f32 %v7978_v40, %v9087_v57 }
0x11b6   : > { %v6811_v38 = vmul.f32 %v7980_v47, %v9089_v56 }
0x11b7   : > { %v6820_v7 = vmul.f32 %v6812_v23, %v8959_v44 }
0x11b8   : > { %v7982_v55 = vpop.eup %7981  ;;  %v6819_v48 = vmul.f32 %v6811_v38, %v8959_v44 }
0x11b9   : > { %v7984_v11 = vpop.eup %7983  ;;  %v6828_v13 = vadd.f32 %v6820_v7, %v8963_v31  ;;  %v6814_v1 = vmul.f32 %v7982_v55, %v9095_v14 }
0x11ba   : > { %v6827_v43 = vadd.f32 %v6819_v48, %v8963_v31  ;;  %v6813_v49 = vmul.f32 %v7984_v11, %v9098_v62 }
0x11bb   : > { %6836 = vst.msk [vmem:[%s9115_s9 + $0x28] sm:$0xff] %vm344_vm1, %v6828_v13  ;;  %v6822_v57 = vmul.f32 %v6814_v1, %v8959_v44 }
0x11bc   : > { %6835 = vst.msk [vmem:[%s9115_s9 + $0x20] sm:$0xff] %vm344_vm1, %v6827_v43  ;;  %v6821_v56 = vmul.f32 %v6813_v49, %v8959_v44 }
0x11bd   : > { %v6830_v20 = vadd.f32 %v6822_v57, %v8963_v31 }
0x11be   : > { %v6829_v39 = vadd.f32 %v6821_v56, %v8963_v31 }
0x11bf   : > { %6838 = vst.msk [vmem:[%s9115_s9 + $0x38] sm:$0xff] %vm344_vm1, %v6830_v20 }
0x11c0   : > { %6837 = vst.msk [vmem:[%s9115_s9 + $0x30] sm:$0xff] %vm344_vm1, %v6829_v39 }
0x11c1 PF: > { %s13_s12 = sadd.s32 1, %s7993_s12  }
0x11c2   : > { %p10_p4 = scmp.ge.s32.totalorder %s13_s12, 4  }
0x11c4   :  { %12 = sbr.rel (!%p10_p4) target bundleno = 1 (0x1), region = 62 }

</bundles_post_ra>
